<compile_context>
chip_gen: v7x
topology: tpu7x:2x2x1
jax: 0.10.0
libtpu: 0.0.40
codegen_flags: <defaults>
</compile_context>

<pallas_src>
import math

import jax
import jax.numpy as jnp
from jax import lax
from jax.experimental import pallas as pl
from jax.experimental.pallas import tpu as pltpu


def rope_kernel(x_ref, pos_ref, freq_ref, o_ref):
    """One (R, tS, d_k) tile: out = x * cos + pair_swap(x) * signed_sin.

    x_ref:    (R, tS, d_k)   input rows (any float dtype)
    pos_ref:  (Rp, tS, 1)    int32 token positions; Rp == 1 when all R rows in
                             the block share the same positions (cos/sin slab is
                             then computed once and broadcast), else Rp == R.
    freq_ref: (1, 1, d_k)    parity-signed inverse freqs [-f0, +f0, -f1, +f1,...]
    o_ref:    (R, tS, d_k)   output (same dtype as x)
    """
    x = x_ref[...].astype(jnp.float32)
    d = x.shape[-1]

    # Pairwise lane swap x[..., 2i] <-> x[..., 2i+1]: two XLU rotates + parity
    # select (XLU slot is idle in this HBM/VPU-bound kernel; the circular wrap
    # lanes are never selected because d_k is even).
    prev_lane = pltpu.roll(x, 1, 2)                  # prev_lane[..., j] = x[..., j-1]
    next_lane = pltpu.roll(x, d - 1, 2)              # next_lane[..., j] = x[..., j+1]
    lane = lax.broadcasted_iota(jnp.int32, x.shape, 2)
    partner = jnp.where((lane & 1) == 0, next_lane, prev_lane)

    # Parity-signed angles: ang[..., 2i] = -pos*f_i, ang[..., 2i+1] = +pos*f_i,
    # so cos(ang) == cos(pos*f_i) and sin(ang) == +/-sin(pos*f_i) (the rotation
    # sign is folded in; no extra VPU multiply).  Computed only on the
    # (Rp, tS, d_k) slab and broadcast across the folded rows at the multiply.
    pos = pos_ref[...].astype(jnp.float32)           # exact for positions < 2**24
    ang = pos * freq_ref[...]
    c = jnp.cos(ang)
    s = jnp.sin(ang)

    # out[2i]   = x[2i]*cos_i   - x[2i+1]*sin_i
    # out[2i+1] = x[2i+1]*cos_i + x[2i]*sin_i
    o_ref[...] = (x * c + partner * s).astype(o_ref.dtype)


def _largest_divisor_leq(n: int, k: int) -> int:
    k = max(1, min(n, k))
    for d in range(k, 0, -1):
        if n % d == 0:
            return d
    return 1


def _choose_tiles(n_rows: int, S: int, D: int, elem_budget: int):
    """Pick (rows_per_block, seq_tile): rows_per_block divides n_rows and
    seq_tile is a multiple of 8 (or the full S)."""
    tS = S if S <= 512 else 512
    # a single (1, tS, D) slab must fit the budget
    while tS * D > elem_budget and tS % 16 == 0 and tS > 16:
        tS //= 2
    # make room for ~8 folded rows (cos/sin + per-step-overhead amortization)
    while (elem_budget // (tS * D)) < min(n_rows, 8) and tS % 16 == 0 and tS > 128:
        tS //= 2
    rows = _largest_divisor_leq(n_rows, max(1, elem_budget // (tS * D)))
    # leftover budget -> longer sequence tiles
    while tS * 2 <= S and tS % 8 == 0 and rows * (tS * 2) * D <= elem_budget:
        tS *= 2
    return rows, tS


def rope_forward(x, token_positions, *, theta: float, d_k: int, max_seq_len: int,
                 elem_budget: int = 256 * 1024):
    """x: (..., seq_len, d_k) float, token_positions: (..., seq_len) int.

    elem_budget: target number of x elements per kernel block (default ~1 MiB
    f32 / 0.5 MiB bf16 input block), sized so double-buffered in+out blocks plus
    f32 temporaries fit v5e's 16 MiB scoped-VMEM default; raise it on v6e/v7x.
    """
    if d_k % 2 != 0:
        raise ValueError("RoPE requires that d_k be even")
    if x.shape[-1] != d_k:
        raise ValueError("last dim of x must equal d_k")
    assert max_seq_len < (1 << 24)   # positions must be exactly representable in f32

    *batch, S, D = x.shape
    batch = tuple(batch)
    nb = len(batch)

    # --- split batch dims: prefix over which token_positions varies, suffix over
    # which they are broadcast (e.g. the head dim).  The shared suffix is folded
    # into the kernel block so cos/sin are computed once per row and reused.
    tp = token_positions
    tp_batch = tuple(tp.shape[:-1])
    if len(tp_batch) > nb:
        raise ValueError("token_positions has more batch dims than x")
    tp_batch_full = (1,) * (nb - len(tp_batch)) + tp_batch
    for bd, td in zip(batch, tp_batch_full):
        if td not in (1, bd):
            raise ValueError("token_positions batch dims must broadcast against x")
    varying = [i for i, td in enumerate(tp_batch_full) if td != 1]
    lv = max(varying) if varying else -1           # last batch dim where positions vary
    BP = math.prod(batch[:lv + 1])                 # rows with distinct position vectors
    BH = math.prod(batch[lv + 1:])                 # rows sharing a position vector (>=1)

    # Layout glue (free reshapes only; no transpose, no full broadcast of pos).
    x3 = x.reshape(BP * BH, S, D)
    pos = tp.reshape(tp_batch_full + tp.shape[-1:])
    pos = pos.reshape(tp_batch_full[:lv + 1] + tp.shape[-1:])
    pos = jnp.broadcast_to(pos, batch[:lv + 1] + (S,)).astype(jnp.int32)
    pos3 = pos.reshape(BP, S, 1)

    # Parity-signed inverse frequencies: [-f0, +f0, -f1, +f1, ...] with
    # f_i = 1 / theta**(2i/d_k)  (tiny (1, 1, d_k) array).
    half = 1.0 / (theta ** (jnp.arange(0, D, 2, dtype=jnp.float32) / D))
    freq_signed = jnp.stack([-half, half], axis=-1).reshape(1, 1, D)

    # --- tiling
    rows, tS = _choose_tiles(BH if BH > 1 else BP, S, D, elem_budget)
    nS = pl.cdiv(S, tS)

    if BH > 1:
        # Fold `rows` position-sharing rows per block; the positions block is a
        # single row, resident across the (innermost) shared-rows grid axis.
        nH = BH // rows
        grid = (BP, nS, nH)
        x_spec = pl.BlockSpec((rows, tS, D), lambda p, s, h: (p * nH + h, s, 0))
        pos_spec = pl.BlockSpec((1, tS, 1), lambda p, s, h: (p, s, 0))
    else:
        # Positions differ for every row: still fold `rows` rows per block to
        # amortize per-step overhead (cos/sin are then computed per row).
        grid = (BP // rows, nS, 1)
        x_spec = pl.BlockSpec((rows, tS, D), lambda p, s, h: (p, s, 0))
        pos_spec = pl.BlockSpec((rows, tS, 1), lambda p, s, h: (p, s, 0))

    out = pl.pallas_call(
        rope_kernel,
        out_shape=jax.ShapeDtypeStruct((BP * BH, S, D), x.dtype),
        grid=grid,
        in_specs=[
            x_spec,
            pos_spec,
            pl.BlockSpec((1, 1, D), lambda p, s, h: (0, 0, 0)),   # shared signed freqs
        ],
        out_specs=x_spec,
        compiler_params=pltpu.CompilerParams(
            dimension_semantics=("parallel", "parallel", "parallel"),
        ),
    )(x3, pos3, freq_signed)

    return out.reshape(x.shape)


def rope_reference(x, token_positions, theta, d_k, max_seq_len):
    """Pure-JAX mirror of the PyTorch module (precomputed caches + gather)."""
    freq = 1.0 / (theta ** (jnp.arange(0, d_k, 2, dtype=jnp.float32) / d_k))
    positions = jnp.arange(max_seq_len, dtype=jnp.float32)
    angles = positions[:, None] * freq[None, :]             # (max_seq_len, d_k/2)
    cos = jnp.cos(angles)[token_positions]                  # (..., S, d_k/2)
    sin = jnp.sin(angles)[token_positions]
    x1 = x[..., 0::2]
    x2 = x[..., 1::2]
    o1 = x1 * cos - x2 * sin
    o2 = x1 * sin + x2 * cos
    return jnp.stack([o1, o2], axis=-1).reshape(x.shape)


if __name__ == "__main__":
    theta = 10000.0
    d_k = 32
    max_seq_len = 64
    batch = (2, 4)
    seq_len = 8

    key = jax.random.PRNGKey(0)
    kx, kp = jax.random.split(key)
    x = jax.random.normal(kx, batch + (seq_len, d_k), dtype=jnp.float32)

    # 1) positions vary per batch element (fully general path, rows folded).
    pos_full = jax.random.randint(kp, batch + (seq_len,), 0, max_seq_len, dtype=jnp.int32)
    out1 = jax.block_until_ready(
        rope_forward(x, pos_full, theta=theta, d_k=d_k, max_seq_len=max_seq_len))
    ref1 = rope_reference(x, pos_full, theta, d_k, max_seq_len)
    assert out1.shape == x.shape and out1.dtype == x.dtype
    assert jnp.allclose(out1, ref1, atol=1e-5, rtol=1e-5), "RoPE kernel mismatch (varying pos)"

    # 2) positions shared across all batch dims (cos/sin amortized across rows).
    pos_shared = jnp.arange(seq_len, dtype=jnp.int32)
    out2 = jax.block_until_ready(
        rope_forward(x, pos_shared, theta=theta, d_k=d_k, max_seq_len=max_seq_len))
    ref2 = rope_reference(x, pos_shared, theta, d_k, max_seq_len)
    assert jnp.allclose(out2, ref2, atol=1e-5, rtol=1e-5), "RoPE kernel mismatch (shared pos)"

    # 3) positions shared across the trailing ("heads") batch dim only.
    pos_mixed = jax.random.randint(
        jax.random.PRNGKey(1), (batch[0], 1, seq_len), 0, max_seq_len, dtype=jnp.int32)
    out3 = jax.block_until_ready(
        rope_forward(x, pos_mixed, theta=theta, d_k=d_k, max_seq_len=max_seq_len))
    ref3 = rope_reference(x, pos_mixed, theta, d_k, max_seq_len)
    assert jnp.allclose(out3, ref3, atol=1e-5, rtol=1e-5), "RoPE kernel mismatch (mixed pos)"

    # 4) bf16 input (f32 math in-kernel, bf16 loads/stores).
    xb = x.astype(jnp.bfloat16)
    out4 = jax.block_until_ready(
        rope_forward(xb, pos_shared, theta=theta, d_k=d_k, max_seq_len=max_seq_len))
    ref4 = rope_reference(xb.astype(jnp.float32), pos_shared, theta, d_k, max_seq_len)
    assert out4.dtype == jnp.bfloat16
    assert jnp.allclose(out4.astype(jnp.float32), ref4, atol=5e-2, rtol=5e-2), \
        "RoPE kernel mismatch (bf16)"

    print("KERNEL_OK")
</pallas_src>

<mosaic_0001>
module attributes {stable_mosaic.version = 11 : i64} {
  func.func @rope_kernel(%arg0: i32, %arg1: i32, %arg2: i32, %arg3: memref<8x8x32xf32, #tpu.memory_space<vmem>>, %arg4: memref<8x8x1xi32, #tpu.memory_space<vmem>>, %arg5: memref<1x1x32xf32, #tpu.memory_space<vmem>>, %arg6: memref<8x8x32xf32, #tpu.memory_space<vmem>>) attributes {dimension_semantics = [#tpu.dimension_semantics<parallel>, #tpu.dimension_semantics<parallel>, #tpu.dimension_semantics<parallel>], iteration_bounds = array<i64: 1, 1, 1>, scalar_prefetch = 0 : i64, scratch_operands = 0 : i64, tpu.core_type = #tpu.core_type<tc>, window_params = [{transform_indices = @transform_0, window_bounds = array<i64: 8, 8, 32>}, {transform_indices = @transform_1, window_bounds = array<i64: 8, 8, 1>}, {pipeline_mode = #tpu.pipeline_mode<synchronous>, transform_indices = @transform_2, window_bounds = array<i64: 1, 1, 32>}, {transform_indices = @transform_3, window_bounds = array<i64: 8, 8, 32>}]} {
    %c0 = arith.constant 0 : index
    %c0_0 = arith.constant 0 : index
    %c0_1 = arith.constant 0 : index
    %0 = vector.load %arg3[%c0, %c0_0, %c0_1] : memref<8x8x32xf32, #tpu.memory_space<vmem>>, vector<8x8x32xf32>
    %c1_i32 = arith.constant 1 : i32
    %1 = tpu.dynamic_rotate %0 by %c1_i32 dim 2 : vector<8x8x32xf32>, i32 -> vector<8x8x32xf32>
    %c31_i32 = arith.constant 31 : i32
    %2 = tpu.dynamic_rotate %0 by %c31_i32 dim 2 : vector<8x8x32xf32>, i32 -> vector<8x8x32xf32>
    %3 = tpu.iota {dimensions = array<i32: 2>} : vector<8x8x32xi32>
    %c1_i32_2 = arith.constant 1 : i32
    %4 = vector.broadcast %c1_i32_2 : i32 to vector<8x8x32xi32>
    %5 = arith.andi %3, %4 : vector<8x8x32xi32>
    %c0_i32 = arith.constant 0 : i32
    %6 = vector.broadcast %c0_i32 : i32 to vector<8x8x32xi32>
    %7 = arith.cmpi eq, %5, %6 : vector<8x8x32xi32>
    %8 = arith.select %7, %2, %1 : vector<8x8x32xi1>, vector<8x8x32xf32>
    %c0_3 = arith.constant 0 : index
    %c0_4 = arith.constant 0 : index
    %c0_5 = arith.constant 0 : index
    %9 = vector.load %arg4[%c0_3, %c0_4, %c0_5] : memref<8x8x1xi32, #tpu.memory_space<vmem>>, vector<8x8x1xi32>
    %10 = arith.sitofp %9 : vector<8x8x1xi32> to vector<8x8x1xf32>
    %c0_6 = arith.constant 0 : index
    %c0_7 = arith.constant 0 : index
    %c0_8 = arith.constant 0 : index
    %11 = vector.load %arg5[%c0_6, %c0_7, %c0_8] : memref<1x1x32xf32, #tpu.memory_space<vmem>>, vector<1x1x32xf32>
    %12 = vector.broadcast %10 : vector<8x8x1xf32> to vector<8x8x32xf32>
    %13 = vector.broadcast %11 : vector<1x1x32xf32> to vector<8x8x32xf32>
    %14 = arith.mulf %12, %13 : vector<8x8x32xf32>
    %15 = math.cos %14 : vector<8x8x32xf32>
    %16 = math.sin %14 : vector<8x8x32xf32>
    %17 = arith.mulf %0, %15 : vector<8x8x32xf32>
    %18 = arith.mulf %8, %16 : vector<8x8x32xf32>
    %19 = arith.addf %17, %18 : vector<8x8x32xf32>
    %c0_9 = arith.constant 0 : index
    %c0_10 = arith.constant 0 : index
    %c0_11 = arith.constant 0 : index
    %20 = vector.load %arg6[%c0_9, %c0_10, %c0_11] : memref<8x8x32xf32, #tpu.memory_space<vmem>>, vector<8x8x32xf32>
    tpu.vector_store %arg6[%c0_9, %c0_10, %c0_11], %19 {strides = array<i32>} : memref<8x8x32xf32, #tpu.memory_space<vmem>>, vector<8x8x32xf32>,
    return
  }
  func.func @transform_0(%arg0: i32, %arg1: i32, %arg2: i32) -> (i32, i32, i32) {
    %c0_i32 = arith.constant 0 : i32
    %c0_i32_0 = arith.constant 0 : i32
    return %arg0, %arg1, %c0_i32 : i32, i32, i32
  }
  func.func @transform_1(%arg0: i32, %arg1: i32, %arg2: i32) -> (i32, i32, i32) {
    %c0_i32 = arith.constant 0 : i32
    %c0_i32_0 = arith.constant 0 : i32
    return %arg0, %arg1, %c0_i32 : i32, i32, i32
  }
  func.func @transform_2(%arg0: i32, %arg1: i32, %arg2: i32) -> (i32, i32, i32) {
    %c0_i32 = arith.constant 0 : i32
    %c0_i32_0 = arith.constant 0 : i32
    %c0_i32_1 = arith.constant 0 : i32
    %c0_i32_2 = arith.constant 0 : i32
    return %c0_i32, %c0_i32_0, %c0_i32_1 : i32, i32, i32
  }
  func.func @transform_3(%arg0: i32, %arg1: i32, %arg2: i32) -> (i32, i32, i32) {
    %c0_i32 = arith.constant 0 : i32
    %c0_i32_0 = arith.constant 0 : i32
    return %arg0, %arg1, %c0_i32 : i32, i32, i32
  }
}

</mosaic_0001>

<bundles_post_ra>
// kernel: tpu_custom_call.1
= control target key start
LH: loop header
LB: loop body
LE: loop exit
PB: predicated region body
PF: predicated region fallthrough
CT: control target
= control target key end

     0   :  { %s2092_s16 = smov 32   ;;  %v2093_v4 = vmov 0   ;;  %s3396_s0 = inlined_call_operand.vmem [shape: f32[8,8,32], index: 0, kind: input, shape index: {}]   ;;  %s3397_s1 = inlined_call_operand.vmem [shape: s32[8,8,1], index: 1, kind: input, shape index: {}]   ;;  %s3398_s2 = inlined_call_operand.vmem [shape: f32[1,1,32], index: 2, kind: input, shape index: {}]   ;;  %s3399_s3 = inlined_call_operand.hbm [shape: f32[8,8,32], index: 3, kind: output, shape index: {}]  }
   0x1   :  { %v2128_v0 = vld [vmem:[%s3396_s0 + $0x10] sm:$0xff]  ;;  %v2133_v1 = vld [vmem:[%s3396_s0] sm:$0xff]  ;;  %v2142_v2 = vld [vmem:[%s3396_s0 + $0x18] sm:$0xff]  ;;  %2027 = vset.pattern.permute.xlu1 %v2093_v4  ;;  %2026 = vset.pattern.permute.xlu0 %v2093_v4 }
   0x2   :  { %30 = vrot.lane.b32.xlu1 %v2128_v0, %s2092_s16  ;;  %24 = vrot.lane.b32.xlu0 %v2133_v1, %s2092_s16  ;;  %v2147_v3 = vld [vmem:[%s3396_s0 + $0x8] sm:$0xff]  ;;  %v2161_v6 = vld [vmem:[%s3396_s0 + $0x20] sm:$0xff] }
   0x3   :  { %v2156_v5 = vld [vmem:[%s3396_s0 + $0x28] sm:$0xff] }
   0x6   :  { %33 = vrot.lane.b32.xlu1 %v2142_v2, %s2092_s16  ;;  %27 = vrot.lane.b32.xlu0 %v2147_v3, %s2092_s16 }
   0x7   :  { %8 = vsyncpa [#allocation3], 0  ;;  %v2170_v7 = vld [vmem:[%s3396_s0 + $0x38] sm:$0xff]  ;;  %v2175_v8 = vld [vmem:[%s3396_s0 + $0x30] sm:$0xff]  ;;  %vm23_vm0 = vcmask 1047808   ;;  %s2102_s7 = smov [#allocation2]  }
   0x8   :  { %v141_v9 = vld [vmem:[%s3397_s1 + $0x8] sm:$0xff]  ;;  %v140_v10 = vld [vmem:[%s3397_s1] sm:$0xff]  ;;  %v142_v13 = vld [vmem:[%s3397_s1 + $0x10] sm:$0xff]  ;;  %s1905_s8 = sshll.u32 %s2102_s7, 4  ;;  %s1906_s8 = int_to_ptr.vmem [resolvable:$true] %s1905_s8 }
   0x9   :  { %v149_v11 = vcvt.s32.f32 %v141_v9  ;;  %v148_v12 = vcvt.s32.f32 %v140_v10  ;;  %v143_v14 = vld [vmem:[%s3397_s1 + $0x18] sm:$0xff]  ;;  %v150_v15 = vcvt.s32.f32 %v142_v13  ;;  %v144_v17 = vld [vmem:[%s3397_s1 + $0x20] sm:$0xff]  ;;  %v145_v18 = vld [vmem:[%s3397_s1 + $0x28] sm:$0xff]  ;;  %s2068_s11 = scalar_lea.vmem %s1906_s8, 1024  ;;  %p2073_p1 = scmp.lt.s32.totalorder %s1906_s8, %s1906_s8 }
   0xa   :  { %39 = vrot.lane.b32.xlu1 %v2156_v5, %s2092_s16  ;;  %36 = vrot.lane.b32.xlu0 %v2161_v6, %s2092_s16  ;;  %v151_v16 = vcvt.s32.f32 %v143_v14  ;;  %v152_v19 = vcvt.s32.f32 %v144_v17  ;;  %v153_v20 = vcvt.s32.f32 %v145_v18  ;;  %v146_v21 = vld [vmem:[%s3397_s1 + $0x30] sm:$0xff]  ;;  %v147_v22 = vld [vmem:[%s3397_s1 + $0x38] sm:$0xff]  ;;  %p2069_p0 = scmp.ne.s32.totalorder %s1906_s8, %s2068_s11  ;;  %p2074_p2 = scmp.lt.s32.totalorder %s2068_s11, %s2068_s11 }
   0xb   :  { %v154_v23 = vcvt.s32.f32 %v146_v21  ;;  %v155_v24 = vcvt.s32.f32 %v147_v22  ;;  %v2232_v41 = vld [vmem:[%s3398_s2] ss:$0 sm:$0xff]  ;;  %v3410_v21 = vmov 920167782   ;;  %s2100_s2 = smov 127  }
   0xc   :  { %p2075_p3 = por %p2074_p2, %p2073_p1 }
   0xe   :  { %45 = vrot.lane.b32.xlu1 %v2170_v7, %s2092_s16  ;;  %42 = vrot.lane.b32.xlu0 %v2175_v8, %s2092_s16  ;;  %p2076_p4 = pnand %p2075_p3, %p2069_p0 }
  0x12   :  { %164 = vperm.xlu1 %2027, %v149_v11   ;;  %159 = vperm.xlu0 %2026, %v148_v12  }
  0x16   :  { %169 = vperm.xlu1 %2027, %v150_v15   ;;  %174 = vperm.xlu0 %2026, %v151_v16  }
  0x1a   :  { %179 = vperm.xlu1 %2027, %v152_v19   ;;  %184 = vperm.xlu0 %2026, %v153_v20   ;;  %v3414_v19 = vmov 2102212464  }
  0x1e   :  { %189 = vperm.xlu1 %2027, %v154_v23   ;;  %194 = vperm.xlu0 %2026, %v155_v24  }
  0x74   :  { %v25_v25 = vpop.permute.xlu0 %24  ;;  %v31_v26 = vpop.permute.xlu1 %30 }
  0x75   :  { %v26_v27 = vsel %vm23_vm0, %v25_v25, %v2133_v1  ;;  %v32_v28 = vsel %vm23_vm0, %v31_v26, %v2128_v0  ;;  %v3404_v25 = vmov 1326507024  }
  0x76   :  { %48 = vrot.lane.b32.xlu1 %v26_v27, %s2092_s16 }
  0x78   :  { %v28_v29 = vpop.permute.xlu0 %27  ;;  %v34_v30 = vpop.permute.xlu1 %33 }
  0x79   :  { %v29_v31 = vsel %vm23_vm0, %v28_v29, %v2147_v3  ;;  %v35_v32 = vsel %vm23_vm0, %v34_v30, %v2142_v2  ;;  %v3418_v30 = vmov 683565275  }
  0x7a   :  { %52 = vrot.lane.b32.xlu1 %v32_v28, %s2092_s16  ;;  %50 = vrot.lane.b32.xlu0 %v29_v31, %s2092_s16 }
  0x7c   :  { %v37_v33 = vpop.permute.xlu0 %36  ;;  %v40_v34 = vpop.permute.xlu1 %39 }
  0x7d   :  { %v38_v35 = vsel %vm23_vm0, %v37_v33, %v2161_v6  ;;  %v41_v36 = vsel %vm23_vm0, %v40_v34, %v2156_v5 }
  0x7e   :  { %54 = vrot.lane.b32.xlu0 %v35_v32, %s2092_s16  ;;  %56 = vrot.lane.b32.xlu1 %v38_v35, %s2092_s16  ;;  %v3408_v32 = vmov 2475754826   ;;  %v3406_v35 = vmov 2131351028  }
  0x80   :  { %v43_v37 = vpop.permute.xlu0 %42  ;;  %v46_v38 = vpop.permute.xlu1 %45 }
  0x81   :  { %v44_v39 = vsel %vm23_vm0, %v43_v37, %v2175_v8  ;;  %v47_v40 = vsel %vm23_vm0, %v46_v38, %v2170_v7 }
  0x82   :  { %58 = vrot.lane.b32.xlu0 %v41_v36, %s2092_s16  ;;  %60 = vrot.lane.b32.xlu1 %v44_v39, %s2092_s16 }
  0x86   :  { %62 = vrot.lane.b32.xlu0 %v47_v40, %s2092_s16  ;;  %s2101_s16 = smov 97  }
  0x91   :  { %v160_v42 = vpop.permute.xlu0 %159  ;;  %v165_v43 = vpop.permute.xlu1 %164 }
  0x92   :  { %v2235_v44 = vmul.f32 %v2232_v41, %v160_v42  ;;  %v2238_v45 = vmul.f32 %v2232_v41, %v165_v43 }
  0x94   :  { %3444 = vst [vmem:[#allocation5_spill] sm:$0xff] %v2235_v44  ;;  %3445 = vst [vmem:[#allocation6_spill] sm:$0xff] %v2238_v45  ;;  %v214_v46 = vand.u32 2139095040, %v2235_v44  ;;  %v317_v47 = vand.u32 2139095040, %v2238_v45  ;;  %v3401_v58 = vand.u32 2147483647, %v2238_v45 }
  0x95   :  { %v170_v53 = vpop.permute.xlu1 %169  ;;  %v3403_v60 = vand.u32 2147483647, %v2235_v44  ;;  %v175_v11 = vpop.permute.xlu0 %174 }
  0x96   :  { %v215_v48 = vshrl.u32 %v214_v46, 23  ;;  %v318_v49 = vshrl.u32 %v317_v47, 23  ;;  %v2243_v55 = vmul.f32 %v2232_v41, %v170_v53  ;;  %v2250_v4 = vand.u32 8388607, %v3401_v58 }
  0x97   :  { %v2254_v9 = vand.u32 8388607, %v3403_v60  ;;  %v2263_v16 = vmul.f32 %v2232_v41, %v175_v11 }
  0x98   :  { %v1917_v50 = vadd.s32 4294967169, %v215_v48  ;;  %v1921_v51 = vadd.s32 4294967169, %v318_v49  ;;  %3446 = vst [vmem:[#allocation7_spill] sm:$0xff] %v2243_v55  ;;  %v420_v57 = vand.u32 2139095040, %v2243_v55  ;;  %v322_v14 = vor.u32 8388608, %v2250_v4 }
  0x99   :  { %v3402_v15 = vand.u32 2147483647, %v2243_v55  ;;  %3447 = vst [vmem:[#allocation8_spill] sm:$0xff] %v2263_v16  ;;  %v219_v18 = vor.u32 8388608, %v2254_v9 }
  0x9a   :  { %v221_v52 = vadd.s32 1, %v1917_v50  ;;  %v324_v54 = vadd.s32 1, %v1921_v51  ;;  %v421_v62 = vshrl.u32 %v420_v57, 23 }
  0x9c   :  { %vm222_vm1 = vcmp.gt.s32.totalorder %v221_v52, 0  ;;  %vm325_vm2 = vcmp.gt.s32.totalorder %v324_v54, 0  ;;  %v1925_v12 = vadd.s32 4294967169, %v421_v62 }
  0x9d   :  { %v223_v56 = vsel %vm222_vm1, %v221_v52, 0  ;;  %v326_v59 = vsel %vm325_vm2, %v324_v54, 0 }
  0x9e   :  { %v225_v61 = vand.u32 31, %v223_v56  ;;  %v328_v63 = vand.u32 31, %v326_v59  ;;  %v2265_v17 = vshrl.u32 %v326_v59, 5  ;;  %v2271_v23 = vshrl.u32 %v223_v56, 5 }
  0x9f   :  { %v427_v27 = vadd.s32 1, %v1925_v12 }
  0xa0   :  { %v2256_v10 = vsub.s32 32, %v225_v61  ;;  %v2258_v13 = vsub.s32 32, %v328_v63  ;;  %v237_v20 = vshll.u32 %v3414_v19, %v225_v61  ;;  %v240_v24 = vshll.u32 %v3410_v21, %v225_v61 }
  0xa1   :  { %v340_v28 = vshll.u32 %v3414_v19, %v328_v63  ;;  %v228_v31 = vshll.u32 %v3418_v30, %v225_v61  ;;  %v231_v33 = vshll.u32 %v3408_v32, %v225_v61  ;;  %v234_v37 = vshll.u32 %v3406_v35, %v225_v61 }
  0xa2   :  { %v238_v22 = vshrl.u32 %v3410_v21, %v2256_v10  ;;  %v241_v26 = vshrl.u32 %v3404_v25, %v2256_v10  ;;  %v341_v29 = vshrl.u32 %v3410_v21, %v2258_v13  ;;  %v229_v34 = vshrl.u32 %v3408_v32, %v2256_v10 }
  0xa3   :  { %v232_v36 = vshrl.u32 %v3406_v35, %v2256_v10  ;;  %v235_v38 = vshrl.u32 %v3414_v19, %v2256_v10  ;;  %v331_v39 = vshll.u32 %v3418_v30, %v328_v63  ;;  %v334_v40 = vshll.u32 %v3408_v32, %v328_v63 }
  0xa4   :  { %v343_v42 = vshll.u32 %v3410_v21, %v328_v63  ;;  %v239_v43 = vor.u32 %v238_v22, %v237_v20  ;;  %v344_v46 = vshrl.u32 %v3404_v25, %v2258_v13  ;;  %v242_v47 = vor.u32 %v241_v26, %v240_v24 }
  0xa5   :  { %vm246_vm3 = vcmp.lt.s32.totalorder %v2271_v23, 4  ;;  %vm428_vm4 = vcmp.gt.s32.totalorder %v427_v27, 0  ;;  %v332_v48 = vshrl.u32 %v3408_v32, %v2258_v13  ;;  %v335_v49 = vshrl.u32 %v3406_v35, %v2258_v13 }
  0xa6   :  { %v337_v50 = vshll.u32 %v3406_v35, %v328_v63  ;;  %v338_v51 = vshrl.u32 %v3414_v19, %v2258_v13  ;;  %v342_v52 = vor.u32 %v341_v29, %v340_v28  ;;  %v230_v53 = vor.u32 %v229_v34, %v228_v31 }
  0xa7   :  { %v233_v54 = vor.u32 %v232_v36, %v231_v33  ;;  %v236_v56 = vor.u32 %v235_v38, %v234_v37  ;;  %vm243_vm5 = vcmp.lt.s32.totalorder %v2271_v23, 1  ;;  %vm245_vm6 = vcmp.lt.s32.totalorder %v2271_v23, 3 }
  0xa8   :  { %v252_v57 = vsel %vm246_vm3, %v239_v43, 920167782  ;;  %v429_v59 = vsel %vm428_vm4, %v427_v27, 0  ;;  %v345_v61 = vor.u32 %v344_v46, %v343_v42  ;;  %vm349_vm7 = vcmp.lt.s32.totalorder %v2265_v17, 4 }
  0xa9   :  { %v256_v62 = vsel %vm246_vm3, %v242_v47, 1326507024  ;;  %v523_v63 = vand.u32 2139095040, %v2263_v16  ;;  %v333_v9 = vor.u32 %v332_v48, %v331_v39  ;;  %v336_v11 = vor.u32 %v335_v49, %v334_v40 }
  0xaa   :  { %v339_v12 = vor.u32 %v338_v51, %v337_v50  ;;  %vm346_vm8 = vcmp.lt.s32.totalorder %v2265_v17, 1  ;;  %vm244_vm9 = vcmp.lt.s32.totalorder %v2271_v23, 2  ;;  %v251_v20 = vsel %vm243_vm5, %v230_v53, %v233_v54 }
  0xab   :  { %v253_v22 = vsel %vm245_vm6, %v236_v56, %v252_v57  ;;  %v431_v24 = vand.u32 31, %v429_v59  ;;  %vm348_vm10 = vcmp.lt.s32.totalorder %v2265_v17, 3  ;;  %v355_v26 = vsel %vm349_vm7, %v342_v52, 920167782 }
  0xac   :  { %v255_v27 = vsel %vm243_vm5, %v233_v54, %v236_v56  ;;  %v257_v28 = vsel %vm245_vm6, %v239_v43, %v256_v62  ;;  %v330_v29 = vshrl.u32 %v3418_v30, %v2258_v13  ;;  %v359_v31 = vsel %vm349_vm7, %v345_v61, 1326507024 }
  0xad   :  { %v2326_v33 = vshll.u32 %v219_v18, 8  ;;  %vm347_vm11 = vcmp.lt.s32.totalorder %v2265_v17, 2  ;;  %v354_v34 = vsel %vm346_vm8, %v333_v9, %v336_v11  ;;  %v2333_v36 = vshll.u32 %v322_v14, 8 }
  0xae   :  { %v254_v37 = vsel %vm244_vm9, %v251_v20, %v253_v22  ;;  %v356_v13 = vsel %vm348_vm10, %v339_v12, %v355_v26  ;;  %v227_v38 = vshrl.u32 %v3418_v30, %v2256_v10  ;;  %v258_v18 = vsel %vm244_vm9, %v255_v27, %v257_v28 }
  0xaf   :  { %v2343_v39 = vsub.s32 32, %v431_v24  ;;  %v358_v40 = vsel %vm346_vm8, %v336_v11, %v339_v12  ;;  %v360_v4 = vsel %vm348_vm10, %v342_v52, %v359_v31  ;;  %v424_v14 = vand.u32 8388607, %v3402_v15  ;;  %v180_v52 = vpop.permute.xlu1 %179 }
  0xb0   :  { %v524_v42 = vshrl.u32 %v523_v63, 23  ;;  %v350_v43 = vsel %vm346_vm8, %v330_v29, %v333_v9  ;;  %v248_v10 = vsel %vm246_vm3, %v236_v56, 2102212464  ;;  %v351_v48 = vsel %vm349_vm7, %v339_v12, 2102212464 }
  0xb1   :  { %v2356_v46 = vmul.u32.u64.low %v2326_v33, %v254_v37  ;;  %v2357_v47 = vmul.u32.u64.high %v2326_v33, %v254_v37, %v2356_v46  ;;  %v357_v49 = vsel %vm347_vm11, %v354_v34, %v356_v13  ;;  %v361_v57 = vsel %vm347_vm11, %v358_v40, %v360_v4 }
  0xb2   :  { %v2365_v50 = vmul.u32.u64.low %v2326_v33, %v258_v18  ;;  %v2366_v51 = vmul.u32.u64.high %v2326_v33, %v258_v18, %v2365_v50  ;;  %v247_v56 = vsel %vm243_vm5, %v227_v38, %v230_v53  ;;  %v443_v61 = vshll.u32 %v3414_v19, %v431_v24 }
  0xb3   :  { %v444_v62 = vshrl.u32 %v3410_v21, %v2343_v39  ;;  %v249_v63 = vsel %vm245_vm6, %v233_v54, %v248_v10  ;;  %v2377_v9 = vshrl.u32 %v429_v59, 5  ;;  %v446_v12 = vshll.u32 %v3410_v21, %v431_v24 }
  0xb4   :  { %v447_v20 = vshrl.u32 %v3404_v25, %v2343_v39  ;;  %v434_v22 = vshll.u32 %v3418_v30, %v431_v24  ;;  %v437_v26 = vshll.u32 %v3408_v32, %v431_v24  ;;  %v1929_v53 = vadd.s32 4294967169, %v524_v42 }
  0xb5   :  { %v2385_v27 = vmul.f32 %v2232_v41, %v180_v52  ;;  %v435_v28 = vshrl.u32 %v3408_v32, %v2343_v39  ;;  %v438_v54 = vshrl.u32 %v3406_v35, %v2343_v39  ;;  %v440_v59 = vshll.u32 %v3406_v35, %v431_v24 }
  0xb6   :  { %v441_v29 = vshrl.u32 %v3414_v19, %v2343_v39  ;;  %v352_v31 = vsel %vm348_vm10, %v336_v11, %v351_v48  ;;  %v2397_v34 = vmul.u32.u64.low %v2333_v36, %v357_v49  ;;  %v2398_v37 = vmul.u32.u64.high %v2333_v36, %v357_v49, %v2397_v34 }
  0xb7   :  { %3448 = vst [vmem:[#allocation9_spill] sm:$0xff] %v2385_v27  ;;  %v445_v13 = vor.u32 %v444_v62, %v443_v61  ;;  %v2402_v38 = vmul.u32.u64.low %v2333_v36, %v361_v57  ;;  %v2403_v18 = vmul.u32.u64.high %v2333_v36, %v361_v57, %v2402_v38  ;;  %v448_v40 = vor.u32 %v447_v20, %v446_v12 }
  0xb8   :  { %3449 = vst [vmem:[#allocation10_spill] sm:$0xff] %v2397_v34  ;;  %vm452_vm12 = vcmp.lt.s32.totalorder %v2377_v9, 4  ;;  %v250_v24 = vsel %vm244_vm9, %v247_v56, %v249_v63  ;;  %v269_v4 = vadd.s32 1, %v2357_v47  ;;  %v530_v42 = vadd.s32 1, %v1929_v53 }
  0xb9   :  { %3450 = vst [vmem:[#allocation11_spill] sm:$0xff] %v2403_v18  ;;  %v626_v11 = vand.u32 2139095040, %v2385_v27  ;;  %vm268_vm13 = vc.u32 %v2366_v51, %v2356_v46  ;;  %v436_v10 = vor.u32 %v435_v28, %v434_v22  ;;  %v439_v48 = vor.u32 %v438_v54, %v437_v26  ;;  %v185_v26 = vpop.permute.xlu0 %184 }
  0xba   :  { %v442_v49 = vor.u32 %v441_v29, %v440_v59  ;;  %vm449_vm14 = vcmp.lt.s32.totalorder %v2377_v9, 1  ;;  %vm451_vm15 = vcmp.lt.s32.totalorder %v2377_v9, 3  ;;  %v458_v50 = vsel %vm452_vm12, %v445_v13, 920167782 }
  0xbb   :  { %v627_v23 = vshrl.u32 %v626_v11, 23  ;;  %v266_v52 = vmul.u32 %v2326_v33, %v250_v24  ;;  %v425_v57 = vor.u32 8388608, %v424_v14  ;;  %v462_v56 = vsel %vm452_vm12, %v448_v40, 1326507024 }
  0xbc   :  { %v270_v61 = vsel %vm268_vm13, %v269_v4, %v2357_v47  ;;  %vm531_vm1 = vcmp.gt.s32.totalorder %v530_v42, 0  ;;  %v353_v62 = vsel %vm347_vm11, %v350_v43, %v352_v31  ;;  %vm450_vm2 = vcmp.lt.s32.totalorder %v2377_v9, 2 }
  0xbd   :  { %v457_v63 = vsel %vm449_vm14, %v436_v10, %v439_v48  ;;  %v459_v12 = vsel %vm451_vm15, %v442_v49, %v458_v50  ;;  %v372_v33 = vadd.s32 1, %v2398_v37  ;;  %v461_v14 = vsel %vm449_vm14, %v439_v48, %v442_v49 }
  0xbe   :  { %v463_v47 = vsel %vm451_vm15, %v445_v13, %v462_v56  ;;  %v1933_v20 = vadd.s32 4294967169, %v627_v23  ;;  %vm371_vm3 = vc.u32 %v2403_v18, %v2397_v34  ;;  %v271_v17 = vadd.s32 %v270_v61, %v266_v52 }
  0xbf   :  { %v2434_v43 = vshll.u32 %v425_v57, 8  ;;  %v532_v22 = vsel %vm531_vm1, %v530_v42, 0  ;;  %v460_v53 = vsel %vm450_vm2, %v457_v63, %v459_v12  ;;  %v369_v28 = vmul.u32 %v2333_v36, %v353_v62 }
  0xc0   :  { %v464_v54 = vsel %vm450_vm2, %v461_v14, %v463_v47  ;;  %v3400_v59 = vand.u32 2147483647, %v2263_v16  ;;  %v373_v29 = vsel %vm371_vm3, %v372_v33, %v2398_v37  ;;  %v534_v31 = vand.u32 31, %v532_v22 }
  0xc1   :  { %v633_v13 = vadd.s32 1, %v1933_v20  ;;  %v2444_v38 = vmul.f32 %v2232_v41, %v185_v26  ;;  %v272_v40 = vadd.s32 536870912, %v271_v17  ;;  %v433_v36 = vshrl.u32 %v3418_v30, %v2343_v39 }
  0xc2   :  { %v2447_v24 = vmul.u32.u64.low %v2434_v43, %v460_v53  ;;  %v2448_v4 = vmul.u32.u64.high %v2434_v43, %v460_v53, %v2447_v24  ;;  %v2454_v42 = vmul.u32.u64.low %v2434_v43, %v464_v54  ;;  %v2455_v11 = vmul.u32.u64.high %v2434_v43, %v464_v54, %v2454_v42 }
  0xc3   :  { %3451 = vst [vmem:[#allocation12_spill] sm:$0xff] %v2444_v38  ;;  %v2457_v50 = vadd.s32 %v373_v29, %v369_v28  ;;  %v454_v37 = vsel %vm452_vm12, %v442_v49, 2102212464  ;;  %v527_v23 = vand.u32 8388607, %v3400_v59  ;;  %v2463_v52 = vsub.s32 32, %v534_v31 }
  0xc4   :  { %3452 = vst [vmem:[#allocation13_spill] sm:$0xff] %v2447_v24  ;;  %vm634_vm4 = vcmp.gt.s32.totalorder %v633_v13, 0  ;;  %v729_v57 = vand.u32 2139095040, %v2444_v38  ;;  %v2466_v56 = vshrl.u32 %v272_v40, 30  ;;  %v453_v39 = vsel %vm449_vm14, %v433_v36, %v436_v10 }
  0xc5   :  { %v455_v61 = vsel %vm451_vm15, %v439_v48, %v454_v37  ;;  %v375_v62 = vadd.s32 536870912, %v2457_v50  ;;  %v635_v63 = vsel %vm634_vm4, %v633_v13, 0  ;;  %v528_v49 = vor.u32 8388608, %v527_v23  ;;  %v190_v48 = vpop.permute.xlu1 %189 }
  0xc6   :  { %3453 = vst [vmem:[#allocation14_spill] sm:$0xff] %v2466_v56  ;;  %v546_v12 = vshll.u32 %v3414_v19, %v534_v31  ;;  %v547_v33 = vshrl.u32 %v3410_v21, %v2463_v52  ;;  %v730_v14 = vshrl.u32 %v729_v57, 23  ;;  %v274_v47 = vshll.u32 %v2466_v56, 30 }
  0xc7   :  { %v456_v20 = vsel %vm450_vm2, %v453_v39, %v455_v61  ;;  %v475_v10 = vadd.s32 1, %v2448_v4  ;;  %v2480_v26 = vshrl.u32 %v532_v22, 5  ;;  %vm474_vm5 = vc.u32 %v2455_v11, %v2447_v24 }
  0xc8   :  { %v537_v53 = vshll.u32 %v3418_v30, %v534_v31  ;;  %v540_v28 = vshll.u32 %v3408_v32, %v534_v31  ;;  %v637_v54 = vand.u32 31, %v635_v63  ;;  %v538_v29 = vshrl.u32 %v3408_v32, %v2463_v52 }
  0xc9   :  { %v541_v9 = vshrl.u32 %v3406_v35, %v2463_v52  ;;  %v543_v13 = vshll.u32 %v3406_v35, %v534_v31  ;;  %v544_v22 = vshrl.u32 %v3414_v19, %v2463_v52  ;;  %v2493_v40 = vshrl.u32 %v375_v62, 30 }
  0xca   :  { %v548_v36 = vor.u32 %v547_v33, %v546_v12  ;;  %v1937_v42 = vadd.s32 4294967169, %v730_v14  ;;  %v2496_v37 = vmul.f32 %v2232_v41, %v190_v48  ;;  %v472_v23 = vmul.u32 %v2434_v43, %v456_v20 }
  0xcb   :  { %v549_v57 = vshll.u32 %v3410_v21, %v534_v31  ;;  %v550_v39 = vshrl.u32 %v3404_v25, %v2463_v52  ;;  %vm555_vm6 = vcmp.lt.s32.totalorder %v2480_v26, 4  ;;  %v2503_v61 = vsub.s32 %v271_v17, %v274_v47 }
  0xcc   :  { %3454 = vst [vmem:[#allocation15_spill] sm:$0xff] %v2496_v37  ;;  %v476_v62 = vsel %vm474_vm5, %v475_v10, %v2448_v4  ;;  %v2509_v12 = vsub.s32 32, %v637_v54  ;;  %v736_v33 = vadd.s32 1, %v1937_v42  ;;  %v539_v14 = vor.u32 %v538_v29, %v537_v53 }
  0xcd   :  { %v542_v48 = vor.u32 %v541_v9, %v540_v28  ;;  %v545_v43 = vor.u32 %v544_v22, %v543_v13  ;;  %v2511_v20 = vshll.u32 %v528_v49, 8  ;;  %vm552_vm7 = vcmp.lt.s32.totalorder %v2480_v26, 1 }
  0xce   :  { %vm554_vm8 = vcmp.lt.s32.totalorder %v2480_v26, 3  ;;  %v561_v17 = vsel %vm555_vm6, %v548_v36, 920167782  ;;  %v3412_v31 = vand.u32 2147483647, %v2385_v27  ;;  %v2518_v47 = vadd.s32 %v476_v62, %v472_v23 }
  0xcf   :  { %v551_v4 = vor.u32 %v550_v39, %v549_v57  ;;  %vm553_vm9 = vcmp.lt.s32.totalorder %v2480_v26, 2  ;;  %vm737_vm10 = vcmp.gt.s32.totalorder %v736_v33, 0  ;;  %v649_v10 = vshll.u32 %v3414_v19, %v637_v54 }
  0xd0   :  { %v650_v49 = vshrl.u32 %v3410_v21, %v2509_v12  ;;  %v652_v53 = vshll.u32 %v3410_v21, %v637_v54  ;;  %v653_v28 = vshrl.u32 %v3404_v25, %v2509_v12  ;;  %v560_v29 = vsel %vm552_vm7, %v539_v14, %v542_v48 }
  0xd1   :  { %v562_v9 = vsel %vm554_vm8, %v545_v43, %v561_v17  ;;  %v2531_v13 = vshrl.u32 %v635_v63, 5  ;;  %v640_v22 = vshll.u32 %v3418_v30, %v637_v54  ;;  %v641_v42 = vshrl.u32 %v3408_v32, %v2509_v12 }
  0xd2   :  { %v643_v23 = vshll.u32 %v3408_v32, %v637_v54  ;;  %v644_v57 = vshrl.u32 %v3406_v35, %v2509_v12  ;;  %v738_v39 = vsel %vm737_vm10, %v736_v33, 0  ;;  %v565_v62 = vsel %vm555_vm6, %v551_v4, 1326507024 }
  0xd3   :  { %v646_v59 = vshll.u32 %v3406_v35, %v637_v54  ;;  %v647_v63 = vshrl.u32 %v3414_v19, %v2509_v12  ;;  %v832_v17 = vand.u32 2139095040, %v2496_v37  ;;  %v536_v58 = vshrl.u32 %v3418_v30, %v2463_v52 }
  0xd4   :  { %v630_v15 = vand.u32 8388607, %v3412_v31  ;;  %v651_v60 = vor.u32 %v650_v49, %v649_v10  ;;  %v654_v25 = vor.u32 %v653_v28, %v652_v53  ;;  %v557_v33 = vsel %vm555_vm6, %v545_v43, 2102212464 }
  0xd5   :  { %v563_v4 = vsel %vm553_vm9, %v560_v29, %v562_v9  ;;  %vm658_vm11 = vcmp.lt.s32.totalorder %v2531_v13, 4  ;;  %v740_v54 = vand.u32 31, %v738_v39  ;;  %v564_v35 = vsel %vm552_vm7, %v542_v48, %v545_v43 }
  0xd6   :  { %v566_v52 = vsel %vm554_vm8, %v548_v36, %v565_v62  ;;  %v642_v32 = vor.u32 %v641_v42, %v640_v22  ;;  %v645_v21 = vor.u32 %v644_v57, %v643_v23  ;;  %v648_v31 = vor.u32 %v647_v63, %v646_v59 }
  0xd7   :  { %vm655_vm12 = vcmp.lt.s32.totalorder %v2531_v13, 1  ;;  %v3413_v10 = vand.u32 2147483647, %v2444_v38  ;;  %v833_v49 = vshrl.u32 %v832_v17, 23  ;;  %v631_v53 = vor.u32 8388608, %v630_v15 }
  0xd8   :  { %vm657_vm13 = vcmp.lt.s32.totalorder %v2531_v13, 3  ;;  %v664_v28 = vsel %vm658_vm11, %v651_v60, 920167782  ;;  %v668_v43 = vsel %vm658_vm11, %v654_v25, 1326507024  ;;  %v556_v36 = vsel %vm552_vm7, %v536_v58, %v539_v14 }
  0xd9   :  { %v558_v59 = vsel %vm554_vm8, %v542_v48, %v557_v33  ;;  %v567_v29 = vsel %vm553_vm9, %v564_v35, %v566_v52  ;;  %v2571_v9 = vsub.s32 32, %v740_v54  ;;  %vm656_vm14 = vcmp.lt.s32.totalorder %v2531_v13, 2 }
  0xda   :  { %v2574_v15 = vmul.u32.u64.low %v2511_v20, %v563_v4  ;;  %v2575_v22 = vmul.u32.u64.high %v2511_v20, %v563_v4, %v2574_v15  ;;  %v663_v25 = vsel %vm655_vm12, %v642_v32, %v645_v21  ;;  %v665_v58 = vsel %vm657_vm13, %v648_v31, %v664_v28 }
  0xdb   :  { %v667_v14 = vsel %vm655_vm12, %v645_v21, %v648_v31  ;;  %v669_v35 = vsel %vm657_vm13, %v651_v60, %v668_v43  ;;  %v1941_v48 = vadd.s32 4294967169, %v833_v49  ;;  %v2591_v57 = vshll.u32 %v631_v53, 8 }
  0xdc   :  { %3455 = vst [vmem:[#allocation16_spill] sm:$0xff] %v2574_v15  ;;  %v2588_v42 = vmul.u32.u64.low %v2511_v20, %v567_v29  ;;  %v2589_v23 = vmul.u32.u64.high %v2511_v20, %v567_v29, %v2588_v42  ;;  %v2595_v62 = vand.u32 8388607, %v3413_v10  ;;  %v639_v63 = vshrl.u32 %v3418_v30, %v2509_v12 }
  0xdd   :  { %v660_v17 = vsel %vm658_vm11, %v648_v31, 2102212464  ;;  %v752_v33 = vshll.u32 %v3414_v19, %v740_v54  ;;  %v3457_v60 = vmov 920167782   ;;  %v666_v49 = vsel %vm656_vm14, %v663_v25, %v665_v58 }
  0xde   :  { %3456 = vst [vmem:[#allocation17_spill] sm:$0xff] %v2589_v23  ;;  %v753_v4 = vshrl.u32 %v3457_v60, %v2571_v9  ;;  %v670_v53 = vsel %vm656_vm14, %v667_v14, %v669_v35  ;;  %v2608_v28 = vshrl.u32 %v738_v39, 5  ;;  %v743_v43 = vshll.u32 %v3418_v30, %v740_v54 }
  0xdf   :  { %v3458_v12 = vmov 2475754826   ;;  %v3459_v42 = vmov 2131351028   ;;  %v839_v19 = vadd.s32 1, %v1941_v48  ;;  %v755_v14 = vshll.u32 %v3457_v60, %v740_v54 }
  0xe0   :  { %v744_v29 = vshrl.u32 %v3458_v12, %v2571_v9  ;;  %v746_v31 = vshll.u32 %v3458_v12, %v740_v54  ;;  %v747_v10 = vshrl.u32 %v3459_v42, %v2571_v9  ;;  %v749_v38 = vshll.u32 %v3459_v42, %v740_v54 }
  0xe1   :  { %v3460_v25 = vmov 2102212464   ;;  %v3461_v39 = vmov 1326507024   ;;  %v659_v30 = vsel %vm655_vm12, %v639_v63, %v642_v32  ;;  %v661_v27 = vsel %vm657_vm13, %v645_v21, %v660_v17  ;;  %v195_v63 = vpop.permute.xlu0 %194 }
  0xe2   :  { %v750_v58 = vshrl.u32 %v3460_v25, %v2571_v9  ;;  %v756_v35 = vshrl.u32 %v3461_v39, %v2571_v9  ;;  %v754_v56 = vor.u32 %v753_v4, %v752_v33  ;;  %vm840_vm15 = vcmp.gt.s32.totalorder %v839_v19, 0 }
  0xe3   :  { %v2627_v48 = vmul.u32.u64.low %v2591_v57, %v666_v49  ;;  %v2628_v16 = vmul.u32.u64.high %v2591_v57, %v666_v49, %v2627_v48  ;;  %vm761_vm1 = vcmp.lt.s32.totalorder %v2608_v28, 4  ;;  %v841_v45 = vsel %vm840_vm15, %v839_v19, 0 }
  0xe4   :  { %v2633_v54 = vmul.u32.u64.low %v2591_v57, %v670_v53  ;;  %v2634_v55 = vmul.u32.u64.high %v2591_v57, %v670_v53, %v2633_v54  ;;  %v2636_v44 = vor.u32 %v744_v29, %v743_v43  ;;  %v2638_v32 = vor.u32 %v747_v10, %v746_v31 }
  0xe5   :  { %v751_v17 = vor.u32 %v750_v58, %v749_v38  ;;  %v757_v33 = vor.u32 %v756_v35, %v755_v14  ;;  %v843_v4 = vand.u32 31, %v841_v45  ;;  %v559_v19 = vsel %vm553_vm9, %v556_v36, %v558_v59 }
  0xe6   :  { %vm758_vm2 = vcmp.lt.s32.totalorder %v2608_v28, 1  ;;  %vm760_vm3 = vcmp.lt.s32.totalorder %v2608_v28, 3  ;;  %v767_v10 = vsel %vm761_vm1, %v754_v56, 920167782  ;;  %v578_v38 = vadd.s32 1, %v2575_v22 }
  0xe7   :  { %v734_v53 = vor.u32 8388608, %v2595_v62  ;;  %vm577_vm4 = vc.u32 %v2589_v23, %v2574_v15  ;;  %v662_v36 = vsel %vm656_vm14, %v659_v30, %v661_v27  ;;  %vm759_vm5 = vcmp.lt.s32.totalorder %v2608_v28, 2 }
  0xe8   :  { %v49_v52 = vpop.permute.xlu1 %48  ;;  %v3432_v59 = vand.u32 2147483647, %v2496_v37  ;;  %v768_v62 = vsel %vm760_vm3, %v751_v17, %v767_v10  ;;  %v478_v27 = vadd.s32 536870912, %v2518_v47  ;;  %v575_v43 = vmul.u32 %v2511_v20, %v559_v19 }
  0xe9   :  { %v2642_v49 = vsel %vm23_vm0, %v49_v52, %v2133_v1  ;;  %v2655_v1 = vmul.f32 %v2232_v41, %v195_v63  ;;  %v766_v41 = vsel %vm758_vm2, %v2636_v44, %v2638_v32  ;;  %v2675_v52 = vsub.s32 32, %v843_v4 }
  0xea   :  { %84 = vrot.lane.b32.xlu1 %v2642_v49, %s2100_s2  ;;  %v579_v31 = vsel %vm577_vm4, %v578_v38, %v2575_v22  ;;  %v678_v58 = vmul.u32 %v2591_v57, %v662_v36  ;;  %v2688_v14 = vshll.u32 %v734_v53, 8  ;;  %v769_v54 = vsel %vm759_vm5, %v766_v41, %v768_v62 }
  0xeb   :  { %v935_v35 = vand.u32 2139095040, %v2655_v1  ;;  %v770_v20 = vsel %vm758_vm2, %v2638_v32, %v751_v17  ;;  %vm680_vm6 = vc.u32 %v2634_v55, %v2627_v48  ;;  %v681_v22 = vadd.s32 1, %v2628_v16 }
  0xec   :  { %v53_v21 = vpop.permute.xlu1 %52  ;;  %v51_v29 = vpop.permute.xlu0 %50  ;;  %v858_v57 = vshll.u32 %v3457_v60, %v843_v4  ;;  %v3462_v19 = vmov 683565275   ;;  %v2708_v38 = vshrl.u32 %v841_v45, 5  ;;  %v856_v53 = vshrl.u32 %v3457_v60, %v2675_v52 }
  0xed   :  { %v2659_v26 = vsel %vm23_vm0, %v53_v21, %v2128_v0  ;;  %v771_v0 = vsel %vm761_vm1, %v757_v33, 1326507024  ;;  %v836_v21 = vand.u32 8388607, %v3432_v59  ;;  %v859_v33 = vshrl.u32 %v3461_v39, %v2675_v52 }
  0xee   :  { %88 = vrot.lane.b32.xlu1 %v2659_v26, %s2100_s2  ;;  %v772_v63 = vsel %vm760_vm3, %v754_v56, %v771_v0  ;;  %v742_v10 = vshrl.u32 %v3462_v19, %v2571_v9  ;;  %v855_v56 = vshll.u32 %v3460_v25, %v843_v4  ;;  %v936_v0 = vshrl.u32 %v935_v35, 23 }
  0xef   :  { %v773_v36 = vsel %vm759_vm5, %v770_v20, %v772_v63  ;;  %v2716_v41 = vmul.u32.u64.low %v2688_v14, %v769_v54  ;;  %v2717_v62 = vmul.u32.u64.high %v2688_v14, %v769_v54, %v2716_v41  ;;  %v849_v59 = vshll.u32 %v3458_v12, %v843_v4 }
  0xf0   :  { %v850_v45 = vshrl.u32 %v3459_v42, %v2675_v52  ;;  %v852_v9 = vshll.u32 %v3459_v42, %v843_v4  ;;  %v853_v13 = vshrl.u32 %v3460_v25, %v2675_v52  ;;  %v57_v30 = vpop.permute.xlu1 %56  ;;  %v55_v37 = vpop.permute.xlu0 %54  ;;  %v763_v20 = vsel %vm761_vm1, %v751_v17, 2102212464 }
  0xf1   :  { %v846_v54 = vshll.u32 %v3462_v19, %v843_v4  ;;  %v847_v35 = vshrl.u32 %v3458_v12, %v2675_v52  ;;  %v860_v63 = vor.u32 %v859_v33, %v858_v57  ;;  %v857_v34 = vor.u32 %v856_v53, %v855_v56 }
  0xf2   :  { %v2732_v15 = vmul.u32.u64.low %v2688_v14, %v773_v36  ;;  %v2733_v23 = vmul.u32.u64.high %v2688_v14, %v773_v36, %v2732_v15  ;;  %vm864_vm7 = vcmp.lt.s32.totalorder %v2708_v38, 4  ;;  %v2736_v18 = vshrl.u32 %v478_v27, 30 }
  0xf3   :  { %v2738_v24 = vadd.s32 %v579_v31, %v575_v43  ;;  %v682_v17 = vsel %vm680_vm6, %v681_v22, %v2628_v16  ;;  %v1945_v4 = vadd.s32 4294967169, %v936_v0  ;;  %v762_v57 = vsel %vm758_vm2, %v742_v10, %v2636_v44 }
  0xf4   :  { %v764_v15 = vsel %vm760_vm3, %v2638_v32, %v763_v20  ;;  %v2750_v33 = vor.u32 %v850_v45, %v849_v59  ;;  %v854_v27 = vor.u32 %v853_v13, %v852_v9  ;;  %v2752_v56 = vor.u32 %v847_v35, %v846_v54  ;;  %v61_v32 = vpop.permute.xlu1 %60  ;;  %v59_v59 = vpop.permute.xlu0 %58 }
  0xf5   :  { %vm861_vm8 = vcmp.lt.s32.totalorder %v2708_v38, 1  ;;  %vm863_vm9 = vcmp.lt.s32.totalorder %v2708_v38, 3  ;;  %v874_v16 = vsel %vm864_vm7, %v860_v63, 1326507024  ;;  %v2758_v43 = vadd.s32 %v682_v17, %v678_v58 }
  0xf6   :  { %v837_v31 = vor.u32 8388608, %v836_v21  ;;  %v870_v44 = vsel %vm864_vm7, %v857_v34, 920167782  ;;  %v942_v22 = vadd.s32 1, %v1945_v4  ;;  %v765_v13 = vsel %vm759_vm5, %v762_v57, %v764_v15 }
  0xf7   :  { %v784_v10 = vadd.s32 1, %v2717_v62  ;;  %v2767_v53 = vsel %vm23_vm0, %v51_v29, %v2147_v3  ;;  %v2771_v58 = vsel %vm23_vm0, %v57_v30, %v2161_v6  ;;  %vm862_vm10 = vcmp.lt.s32.totalorder %v2708_v38, 2 }
  0xf8   :  { %v873_v21 = vsel %vm861_vm8, %v2750_v33, %v854_v27  ;;  %v875_v28 = vsel %vm863_vm9, %v857_v34, %v874_v16  ;;  %vm943_vm11 = vcmp.gt.s32.totalorder %v942_v22, 0  ;;  %86 = vrot.lane.b32.xlu0 %v2767_v53, %s2100_s2  ;;  %92 = vrot.lane.b32.xlu1 %v2771_v58, %s2100_s2  ;;  %v869_v3 = vsel %vm861_vm8, %v2752_v56, %v2750_v33  ;;  %v63_v17 = vpop.permute.xlu0 %62 }
  0xf9   :  { %v871_v6 = vsel %vm863_vm9, %v854_v27, %v870_v44  ;;  %v2791_v30 = vsel %vm23_vm0, %v55_v37, %v2142_v2  ;;  %v2795_v34 = vsel %vm23_vm0, %v61_v32, %v2175_v8  ;;  %v3463_v29 = vsub.s32 0, %v2503_v61 }
  0xfa   :  { %vm783_vm12 = vc.u32 %v2733_v23, %v2716_v41  ;;  %v2804_v0 = vshll.u32 %v837_v31, 8  ;;  %v944_v45 = vsel %vm943_vm11, %v942_v22, 0  ;;  %v480_v9 = vshll.u32 %v2736_v18, 30 }
  0xfb   :  { %v2800_v36 = vmin.u32 %v3463_v29, %v2503_v61  ;;  %v581_v2 = vadd.s32 536870912, %v2738_v24  ;;  %v876_v37 = vsel %vm862_vm10, %v873_v21, %v875_v28  ;;  %v946_v8 = vand.u32 31, %v944_v45 }
  0xfc   :  { %v684_v20 = vadd.s32 536870912, %v2758_v43  ;;  %v781_v54 = vmul.u32 %v2688_v14, %v765_v13  ;;  %v872_v35 = vsel %vm862_vm10, %v869_v3, %v871_v6  ;;  %v932_v63 = vand.u32 2147483647, %v2655_v1  ;;  %90 = vrot.lane.b32.xlu0 %v2791_v30, %s2100_s2  ;;  %96 = vrot.lane.b32.xlu1 %v2795_v34, %s2100_s2 }
  0xfd   :  { %v785_v4 = vsel %vm783_vm12, %v784_v10, %v2717_v62  ;;  %v845_v57 = vshrl.u32 %v3462_v19, %v2675_v52  ;;  %v2822_v15 = vsub.s32 32, %v946_v8  ;;  %v2826_v14 = vsel %vm23_vm0, %v59_v59, %v2156_v5 }
  0xfe   :  { %v866_v16 = vsel %vm864_vm7, %v854_v27, 2102212464  ;;  %v2831_v31 = vmul.u32.u64.low %v2804_v0, %v876_v37  ;;  %v2832_v44 = vmul.u32.u64.high %v2804_v0, %v876_v37, %v2831_v31  ;;  %v958_v22 = vshll.u32 %v3460_v25, %v946_v8 }
  0xff   :  { %v2836_v62 = vmul.u32.u64.low %v2804_v0, %v872_v35  ;;  %v2837_v32 = vmul.u32.u64.high %v2804_v0, %v872_v35, %v2836_v62  ;;  %v949_v52 = vshll.u32 %v3462_v19, %v946_v8  ;;  %v2843_v5 = vsel %vm23_vm0, %v63_v17, %v2170_v7 }
 0x100   :  { %v2845_v59 = vshrl.u32 %v944_v45, 5  ;;  %v952_v27 = vshll.u32 %v3458_v12, %v946_v8  ;;  %v955_v13 = vshll.u32 %v3459_v42, %v946_v8  ;;  %v959_v10 = vshrl.u32 %v3457_v60, %v2822_v15  ;;  %94 = vrot.lane.b32.xlu0 %v2826_v14, %s2100_s2  ;;  %108 = vrot.lane.b32.xlu1 %v2642_v49, %s2101_s16 }
 0x101   :  { %v950_v7 = vshrl.u32 %v3458_v12, %v2822_v15  ;;  %v953_v21 = vshrl.u32 %v3459_v42, %v2822_v15  ;;  %v956_v28 = vshrl.u32 %v3460_v25, %v2822_v15  ;;  %v961_v3 = vshll.u32 %v3457_v60, %v946_v8 }
 0x102   :  { %v3464_v6 = vshll.u32 %v2493_v40, 30  ;;  %v279_v45 = vclz %v2800_v36  ;;  %v2868_v37 = vadd.s32 %v785_v4, %v781_v54  ;;  %v960_v49 = vor.u32 %v959_v10, %v958_v22 }
 0x103   :  { %v2871_v12 = vsub.s32 %v2518_v47, %v480_v9  ;;  %v2873_v35 = vshrl.u32 %v581_v2, 30  ;;  %v939_v42 = vand.u32 8388607, %v932_v63  ;;  %v962_v60 = vshrl.u32 %v3461_v39, %v2822_v15 }
 0x104   :  { %v2865_v29 = vsub.s32 %v2457_v50, %v3464_v6  ;;  %v2879_v25 = vshrl.u32 %v684_v20, 30  ;;  %v865_v50 = vsel %vm861_vm8, %v845_v57, %v2752_v56  ;;  %v867_v36 = vsel %vm863_vm9, %v2750_v33, %v866_v16  ;;  %98 = vrot.lane.b32.xlu0 %v2843_v5, %s2100_s2  ;;  %112 = vrot.lane.b32.xlu1 %v2659_v26, %s2101_s16 }
 0x105   :  { %vm967_vm0 = vcmp.lt.s32.totalorder %v2845_v59, 4  ;;  %v951_v47 = vor.u32 %v950_v7, %v949_v52  ;;  %v954_v39 = vor.u32 %v953_v21, %v952_v27  ;;  %v957_v9 = vor.u32 %v956_v28, %v955_v13 }
 0x106   :  { %v963_v2 = vor.u32 %v962_v60, %v961_v3  ;;  %v787_v8 = vadd.s32 536870912, %v2868_v37  ;;  %vm964_vm13 = vcmp.lt.s32.totalorder %v2845_v59, 1  ;;  %vm966_vm14 = vcmp.lt.s32.totalorder %v2845_v59, 3 }
 0x107   :  { %v973_v33 = vsel %vm967_vm0, %v960_v49, 920167782  ;;  %v380_v56 = vsub.s32 0, %v2865_v29  ;;  %v583_v20 = vshll.u32 %v2873_v35, 30  ;;  %v940_v54 = vor.u32 8388608, %v939_v42 }
 0x108   :  { %v977_v26 = vsel %vm967_vm0, %v963_v2, 1326507024  ;;  %v1919_v17 = vadd.s32 4294967294, %v279_v45  ;;  %v483_v4 = vsub.s32 0, %v2871_v12  ;;  %v868_v57 = vsel %vm862_vm10, %v865_v50, %v867_v36  ;;  %110 = vrot.lane.b32.xlu0 %v2767_v53, %s2101_s16  ;;  %116 = vrot.lane.b32.xlu1 %v2771_v58, %s2101_s16 }
 0x109   :  { %v887_v16 = vadd.s32 1, %v2837_v32  ;;  %vm886_vm15 = vc.u32 %v2832_v44, %v2836_v62  ;;  %vm965_vm1 = vcmp.lt.s32.totalorder %v2845_v59, 2  ;;  %v972_v31 = vsel %vm964_vm13, %v951_v47, %v954_v39 }
 0x10a   :  { %v974_v38 = vsel %vm966_vm14, %v957_v9, %v973_v33  ;;  %v686_v22 = vshll.u32 %v2879_v25, 30  ;;  %v2917_v52 = vshrl.u32 %v787_v8, 30  ;;  %v976_v53 = vsel %vm964_vm13, %v954_v39, %v957_v9 }
 0x10b   :  { %v978_v58 = vsel %vm966_vm14, %v960_v49, %v977_v26  ;;  %v2924_v27 = vsub.s32 %v2738_v24, %v583_v20  ;;  %v884_v13 = vmul.u32 %v2804_v0, %v868_v57  ;;  %v980_v10 = vshll.u32 %v940_v54, 8 }
 0x10c   :  { %v888_v7 = vsel %vm886_vm15, %v887_v16, %v2837_v32  ;;  %v975_v21 = vsel %vm965_vm1, %v972_v31, %v974_v38  ;;  %114 = vrot.lane.b32.xlu0 %v2791_v30, %s2101_s16  ;;  %120 = vrot.lane.b32.xlu1 %v2795_v34, %s2101_s16  ;;  %v1926_v28 = vmin.u32 %v483_v4, %v2871_v12  ;;  %vm1920_vm2 = vcmp.lt.s32.totalorder %v1919_v17, 0 }
 0x10d   :  { %v979_v24 = vsel %vm965_vm1, %v976_v53, %v978_v58  ;;  %v1922_v3 = vmin.u32 %v380_v56, %v2865_v29  ;;  %v2939_v0 = vsub.s32 %v2758_v43, %v686_v22  ;;  %v789_v32 = vshll.u32 %v2917_v52, 30 }
 0x10e   :  { %v586_v6 = vsub.s32 0, %v2924_v27  ;;  %v889_v45 = vadd.s32 %v888_v7, %v884_v13  ;;  %v2943_v30 = vmul.u32.u64.low %v980_v10, %v975_v21  ;;  %v2944_v49 = vmul.u32.u64.high %v980_v10, %v975_v21, %v2943_v30 }
 0x10f   :  { %v948_v34 = vshrl.u32 %v3462_v19, %v2822_v15  ;;  %v2949_v42 = vmul.u32.u64.low %v980_v10, %v979_v24  ;;  %v2950_v60 = vmul.u32.u64.high %v980_v10, %v979_v24, %v2949_v42  ;;  %v485_v43 = vclz %v1926_v28 }
 0x110   :  { %118 = vrot.lane.b32.xlu0 %v2826_v14, %s2101_s16  ;;  %v969_v50 = vsel %vm967_vm0, %v957_v9, 2102212464  ;;  %v382_v36 = vclz %v1922_v3  ;;  %v282_v2 = vsel %vm1920_vm2, 0, %v1919_v17  ;;  %v689_v8 = vsub.s32 0, %v2939_v0 }
 0x111   :  { %v2958_v33 = vsub.s32 %v2868_v37, %v789_v32  ;;  %v1930_v56 = vmin.u32 %v586_v6, %v2924_v27  ;;  %v890_v19 = vadd.s32 536870912, %v889_v45  ;;  %v968_v15 = vsel %vm964_vm13, %v948_v34, %v951_v47 }
 0x112   :  { %v970_v14 = vsel %vm966_vm14, %v954_v39, %v969_v50  ;;  %v287_v9 = vsub.s32 4294967266, %v282_v2  ;;  %v1927_v20 = vadd.s32 4294967294, %v485_v43  ;;  %v1923_v54 = vadd.s32 4294967294, %v382_v36  ;;  %v3465_v43 = vld [vmem:[#allocation13_spill] sm:$0xff] }
 0x113   :  { %v1934_v26 = vmin.u32 %v689_v8, %v2939_v0  ;;  %v792_v37 = vsub.s32 0, %v2958_v33  ;;  %v588_v17 = vclz %v1930_v56  ;;  %v2969_v4 = vshrl.u32 %v890_v19, 30  ;;  %v3466_v19 = vld [vmem:[#allocation11_spill] sm:$0xff] }
 0x114   :  { %122 = vrot.lane.b32.xlu0 %v2843_v5, %s2101_s16  ;;  %v971_v57 = vsel %vm965_vm1, %v968_v15, %v970_v14  ;;  %v990_v47 = vadd.s32 1, %v2944_v49  ;;  %vm989_vm3 = vc.u32 %v2950_v60, %v2943_v30  ;;  %v267_v5 = vadd.s32 %v2356_v46, %v2366_v51  ;;  %v3467_v15 = vld [vmem:[#allocation10_spill] sm:$0xff] }
 0x115   :  { %v283_v39 = vsub.s32 32, %v282_v2  ;;  %v288_v16 = vadd.s32 127, %v287_v9  ;;  %vm1928_vm4 = vcmp.lt.s32.totalorder %v1927_v20, 0  ;;  %vm1924_vm5 = vcmp.lt.s32.totalorder %v1923_v54, 0 }
 0x116   :  { %v691_v31 = vclz %v1934_v26  ;;  %v1938_v38 = vmin.u32 %v792_v37, %v2958_v33  ;;  %v987_v22 = vmul.u32 %v980_v10, %v971_v57  ;;  %v1931_v53 = vadd.s32 4294967294, %v588_v17 }
 0x117   :  { %v892_v59 = vshll.u32 %v2969_v4, 30  ;;  %v991_v58 = vsel %vm989_vm3, %v990_v47, %v2944_v49  ;;  %v488_v13 = vsel %vm1928_vm4, 0, %v1927_v20  ;;  %v385_v7 = vsel %vm1924_vm5, 0, %v1923_v54 }
 0x118   :  { %v284_v21 = vshll.u32 %v2503_v61, %v282_v2  ;;  %v285_v28 = vshrl.u32 %v267_v5, %v283_v39  ;;  %v289_v24 = vshll.u32 %v288_v16, 23  ;;  %v1935_v46 = vadd.s32 4294967294, %v691_v31 }
 0x119   :  { %v794_v51 = vclz %v1938_v38  ;;  %v992_v3 = vadd.s32 %v991_v58, %v987_v22  ;;  %v493_v32 = vsub.s32 4294967266, %v488_v13  ;;  %vm1932_vm6 = vcmp.lt.s32.totalorder %v1931_v53, 0  ;;  %v3468_v38 = vld [vmem:[#allocation17_spill] sm:$0xff]  ;;  %v3469_v22 = vld [vmem:[#allocation16_spill] sm:$0xff] }
 0x11a   :  { %v2982_v6 = vsub.s32 %v889_v45, %v892_v59  ;;  %v390_v34 = vsub.s32 4294967266, %v385_v7  ;;  %v286_v10 = vor.u32 %v285_v28, %v284_v21  ;;  %v290_v42 = vor.u32 4788187, %v289_v24 }
 0x11b   :  { %v473_v50 = vadd.s32 %v3465_v43, %v2455_v11  ;;  %v489_v49 = vsub.s32 32, %v488_v13  ;;  %v591_v36 = vsel %vm1932_vm6, 0, %v1931_v53  ;;  %vm1936_vm7 = vcmp.lt.s32.totalorder %v1935_v46, 0 }
 0x11c   :  { %v1939_v8 = vadd.s32 4294967294, %v794_v51  ;;  %v993_v61 = vadd.s32 536870912, %v992_v3  ;;  %v494_v2 = vadd.s32 127, %v493_v32  ;;  %v895_v56 = vsub.s32 0, %v2982_v6 }
 0x11d   :  { %v370_v14 = vadd.s32 %v3467_v15, %v3466_v19  ;;  %v386_v9 = vsub.s32 32, %v385_v7  ;;  %v391_v45 = vadd.s32 127, %v390_v34  ;;  %v291_v20 = vand.u32 2147483647, %v290_v42 }
 0x11e   :  { %v293_v54 = vcvt.s32.f32 %v286_v10  ;;  %v596_v26 = vsub.s32 4294967266, %v591_v36  ;;  %v694_v37 = vsel %vm1936_vm7, 0, %v1935_v46  ;;  %v490_v17 = vshll.u32 %v2871_v12, %v488_v13 }
 0x11f   :  { %v491_v11 = vshrl.u32 %v473_v50, %v489_v49  ;;  %vm1940_vm8 = vcmp.lt.s32.totalorder %v1939_v8, 0  ;;  %v2990_v57 = vshrl.u32 %v993_v61, 30  ;;  %v495_v47 = vshll.u32 %v494_v2, 23 }
 0x120   :  { %v1942_v5 = vmin.u32 %v895_v56, %v2982_v6  ;;  %v387_v39 = vshll.u32 %v2865_v29, %v385_v7  ;;  %v388_v16 = vshrl.u32 %v370_v14, %v386_v9  ;;  %v699_v31 = vsub.s32 4294967266, %v694_v37  ;;  %v3470_v29 = vld [vmem:[#allocation5_spill] sm:$0xff] }
 0x121   :  { %v576_v53 = vadd.s32 %v3469_v22, %v3468_v38  ;;  %v592_v59 = vsub.s32 32, %v591_v36  ;;  %v597_v58 = vadd.s32 127, %v596_v26  ;;  %v797_v21 = vsel %vm1940_vm8, 0, %v1939_v8 }
 0x122   :  { %v392_v28 = vshll.u32 %v391_v45, 23  ;;  %v294_v24 = vmul.f32 %v293_v54, %v291_v20  ;;  %v492_v12 = vor.u32 %v491_v11, %v490_v17  ;;  %v995_v13 = vshll.u32 %v2990_v57, 30 }
 0x123   :  { %v496_v46 = vor.u32 4788187, %v495_v47  ;;  %v679_v51 = vadd.s32 %v2627_v48, %v2634_v55  ;;  %v695_v32 = vsub.s32 32, %v694_v37  ;;  %v897_v34 = vclz %v1942_v5 }
 0x124   :  { %vm213_vm9 = vcmp.lt.s32.totalorder %v3470_v29, 0  ;;  %v700_v7 = vadd.s32 127, %v699_v31  ;;  %v802_v10 = vsub.s32 4294967266, %v797_v21  ;;  %v389_v42 = vor.u32 %v388_v16, %v387_v39 }
 0x125   :  { %v593_v43 = vshll.u32 %v2924_v27, %v591_v36  ;;  %v594_v50 = vshrl.u32 %v576_v53, %v592_v59  ;;  %v598_v49 = vshll.u32 %v597_v58, 23  ;;  %v393_v8 = vor.u32 4788187, %v392_v28 }
 0x126   :  { %v295_v61 = vxor.u32 2147483648, %v294_v24  ;;  %v499_v2 = vcvt.s32.f32 %v492_v12  ;;  %v3001_v56 = vsub.s32 %v992_v3, %v995_v13  ;;  %v497_v19 = vand.u32 2147483647, %v496_v46  ;;  %v3474_v46 = vld [vmem:[#allocation7_spill] sm:$0xff] }
 0x127   :  { %v696_v15 = vshll.u32 %v2939_v0, %v694_v37  ;;  %v697_v55 = vshrl.u32 %v679_v51, %v695_v32  ;;  %v1943_v48 = vadd.s32 4294967294, %v897_v34  ;;  %v701_v14 = vshll.u32 %v700_v7, 23  ;;  %v3475_v32 = vld [vmem:[#allocation6_spill] sm:$0xff] }
 0x128   :  { %v782_v9 = vadd.s32 %v2716_v41, %v2733_v23  ;;  %v798_v45 = vsub.s32 32, %v797_v21  ;;  %v803_v20 = vadd.s32 127, %v802_v10  ;;  %v595_v54 = vor.u32 %v594_v50, %v593_v43 }
 0x129   :  { %v599_v27 = vor.u32 4788187, %v598_v49  ;;  %v394_v36 = vand.u32 2147483647, %v393_v8  ;;  %v396_v26 = vcvt.s32.f32 %v389_v42  ;;  %v3471_v17 = vand.u32 2147483647, %v3470_v29 }
 0x12a   :  { %v998_v0 = vsub.s32 0, %v3001_v56  ;;  %v296_v37 = vsel %vm213_vm9, %v295_v61, %v294_v24  ;;  %v500_v11 = vmul.f32 %v499_v2, %v497_v19  ;;  %v698_v47 = vor.u32 %v697_v55, %v696_v15  ;;  %v3479_v15 = vld [vmem:[#allocation8_spill] sm:$0xff] }
 0x12b   :  { %vm3008_vm10 = vcmp.le.f32.partialorder %v3471_v17, 0.7853982  ;;  %vm1944_vm11 = vcmp.lt.s32.totalorder %v1943_v48, 0  ;;  %v702_v23 = vor.u32 4788187, %v701_v14  ;;  %v799_v41 = vshll.u32 %v2958_v33, %v797_v21 }
 0x12c   :  { %v800_v5 = vshrl.u32 %v782_v9, %v798_v45  ;;  %v804_v39 = vshll.u32 %v803_v20, 23  ;;  %v600_v16 = vand.u32 2147483647, %v599_v27  ;;  %v602_v31 = vcvt.s32.f32 %v595_v54 }
 0x12d   :  { %v900_v38 = vsel %vm1944_vm11, 0, %v1943_v48  ;;  %v1946_v22 = vmin.u32 %v998_v0, %v3001_v56  ;;  %v397_v53 = vmul.f32 %v396_v26, %v394_v36  ;;  %v299_v59 = vsel %vm3008_vm10, %v3470_v29, %v296_v37  ;;  %v3480_v48 = vld [vmem:[#allocation14_spill] sm:$0xff] }
 0x12e   :  { %v501_v58 = vxor.u32 2147483648, %v500_v11  ;;  %v703_v28 = vand.u32 2147483647, %v702_v23  ;;  %v705_v24 = vcvt.s32.f32 %v698_v47  ;;  %v801_v12 = vor.u32 %v800_v5, %v799_v41 }
 0x12f   :  { %v805_v13 = vor.u32 4788187, %v804_v39  ;;  %vm419_vm12 = vcmp.lt.s32.totalorder %v3474_v46, 0  ;;  %v603_v33 = vmul.f32 %v602_v31, %v600_v16  ;;  %v905_v21 = vsub.s32 4294967266, %v900_v38  ;;  %v3491_v39 = vld [vmem:[#allocation12_spill] sm:$0xff] }
 0x130   :  { %2028 = vcosq.f32 %v299_v59  ;;  %v1000_v51 = vclz %v1946_v22  ;;  %vm316_vm0 = vcmp.lt.s32.totalorder %v3475_v32, 0  ;;  %v398_v34 = vxor.u32 2147483648, %v397_v53 }
 0x131   :  { %2030 = vsinq.f32 %v299_v59  ;;  %v3476_v7 = vand.u32 2147483647, %v3474_v46  ;;  %v502_v42 = vsel %vm419_vm12, %v501_v58, %v500_v11  ;;  %v706_v43 = vmul.f32 %v705_v24, %v703_v28 }
 0x132   :  { %v806_v50 = vand.u32 2147483647, %v805_v13  ;;  %v808_v49 = vcvt.s32.f32 %v801_v12  ;;  %v604_v8 = vxor.u32 2147483648, %v603_v33  ;;  %v885_v61 = vadd.s32 %v2836_v62, %v2832_v44  ;;  %v3487_v44 = vld [vmem:[#allocation9_spill] sm:$0xff]  ;;  %v2062_v13 = vld [vmem:[%s3396_s0 + $0x8] sm:$0xff] }
 0x133   :  { %vm3024_vm13 = vcmp.le.f32.partialorder %v3476_v7, 0.7853982  ;;  %v901_v2 = vsub.s32 32, %v900_v38  ;;  %v906_v19 = vadd.s32 127, %v905_v21  ;;  %vm522_vm14 = vcmp.lt.s32.totalorder %v3479_v15, 0 }
 0x134   :  { %v1947_v55 = vadd.s32 4294967294, %v1000_v51  ;;  %v297_v14 = vsub.s32 4, %v3480_v48  ;;  %v3481_v9 = vand.u32 2147483647, %v3475_v32  ;;  %v3484_v20 = vand.u32 2147483647, %v3479_v15 }
 0x135   :  { %vm625_vm2 = vcmp.lt.s32.totalorder %v3487_v44, 0  ;;  %v399_v62 = vsel %vm316_vm0, %v398_v34, %v397_v53  ;;  %v505_v27 = vsel %vm3024_vm13, %v3474_v46, %v502_v42  ;;  %v707_v36 = vxor.u32 2147483648, %v706_v43 }
 0x136   :  { %vm3036_vm15 = vcmp.le.f32.partialorder %v3481_v9, 0.7853982  ;;  %vm3042_vm1 = vcmp.le.f32.partialorder %v3484_v20, 0.7853982  ;;  %v809_v26 = vmul.f32 %v808_v49, %v806_v50  ;;  %v605_v17 = vsel %vm522_vm14, %v604_v8, %v603_v33  ;;  %v3495_v50 = vld [vmem:[#allocation15_spill] sm:$0xff] }
 0x137   :  { %v902_v0 = vshll.u32 %v2982_v6, %v900_v38  ;;  %v903_v37 = vshrl.u32 %v885_v61, %v901_v2  ;;  %v907_v11 = vshll.u32 %v906_v19, 23  ;;  %vm1948_vm3 = vcmp.lt.s32.totalorder %v1947_v55, 0 }
 0x138   :  { %v298_v47 = vsel %vm213_vm9, %v297_v14, %v3480_v48  ;;  %v402_v23 = vsel %vm3036_vm15, %v3475_v32, %v399_v62  ;;  %2032 = vcosq.f32 %v505_v27  ;;  %v3488_v41 = vand.u32 2147483647, %v3487_v44 }
 0x139   :  { %vm3440_vm5 = vcmp.lt.s32.totalorder %v3491_v39, 0  ;;  %2034 = vsinq.f32 %v505_v27  ;;  %v608_v16 = vsel %vm3042_vm1, %v3479_v15, %v605_v17  ;;  %v708_v31 = vsel %vm625_vm2, %v707_v36, %v706_v43 }
 0x13a   :  { %vm3063_vm4 = vcmp.le.f32.partialorder %v3488_v41, 0.7853982  ;;  %v3068_v6 = vpop.eup %2028  ;;  %v810_v38 = vxor.u32 2147483648, %v809_v26  ;;  %v904_v53 = vor.u32 %v903_v37, %v902_v0  ;;  %v908_v59 = vor.u32 4788187, %v907_v11 }
 0x13b   :  { %v3075_v22 = vpop.eup %2030  ;;  %v3077_v58 = vsel %vm1948_vm3, 0, %v1947_v55  ;;  %v300_v28 = vsel %vm3008_vm10, 0, %v298_v47  ;;  %2036 = vcosq.f32 %v402_v23  ;;  %v3492_v12 = vand.u32 2147483647, %v3491_v39 }
 0x13c   :  { %v304_v24 = vand.u32 3, %v300_v28  ;;  %2038 = vsinq.f32 %v402_v23  ;;  %v503_v33 = vsub.s32 4, %v2736_v18  ;;  %v711_v21 = vsel %vm3063_vm4, %v3487_v44, %v708_v31 }
 0x13d   :  { %vm3083_vm6 = vcmp.le.f32.partialorder %v3492_v12, 0.7853982  ;;  %2040 = vcosq.f32 %v608_v16  ;;  %v811_v3 = vsel %vm3440_vm5, %v810_v38, %v809_v26  ;;  %v1008_v51 = vsub.s32 4294967266, %v3077_v58 }
 0x13e   :  { %v909_v34 = vand.u32 2147483647, %v908_v59  ;;  %v911_v7 = vcvt.s32.f32 %v904_v53  ;;  %v307_v42 = vxor.u32 2147483648, %v3075_v22  ;;  %v310_v43 = vxor.u32 2147483648, %v3068_v6 }
 0x13f   :  { %2042 = vsinq.f32 %v608_v16  ;;  %vm831_vm7 = vcmp.lt.s32.totalorder %v3495_v50, 0  ;;  %vm306_vm8 = vcmp.eq.s32.totalorder %v304_v24, 0  ;;  %vm309_vm9 = vcmp.eq.s32.totalorder %v304_v24, 2 }
 0x140   :  { %v1128_v49 = vadd.s32 3, %v300_v28  ;;  %2044 = vcosq.f32 %v711_v21  ;;  %v814_v8 = vsel %vm3083_vm6, %v3491_v39, %v811_v3  ;;  %v72_v61 = vlaneseq }
 0x141   :  { %v504_v2 = vsel %vm419_vm12, %v503_v33, %v2736_v18  ;;  %v988_v19 = vadd.s32 %v2943_v30, %v2950_v60  ;;  %v1004_v55 = vsub.s32 32, %v3077_v58  ;;  %v1009_v48 = vadd.s32 127, %v1008_v51 }
 0x142   :  { %vm305_vm10 = vcmp.lt.s32.totalorder %v304_v24, 2  ;;  %v3106_v14 = vpop.eup %2032  ;;  %v912_v9 = vmul.f32 %v911_v7, %v909_v34  ;;  %v308_v20 = vsel %vm306_vm8, %v3068_v6, %v307_v42  ;;  %v311_v62 = vsel %vm309_vm9, %v310_v43, %v3075_v22 }
 0x143   :  { %v400_v27 = vsub.s32 4, %v2493_v40  ;;  %v3111_v36 = vpop.eup %2034  ;;  %2046 = vsinq.f32 %v711_v21  ;;  %v3496_v18 = vand.u32 2147483647, %v3495_v50  ;;  %v1129_v60 = vand.u32 3, %v1128_v49 }
 0x144   :  { %v506_v26 = vsel %vm3024_vm13, 0, %v504_v2  ;;  %2048 = vcosq.f32 %v814_v8  ;;  %v3121_v17 = vand.u32 127, %v72_v61  ;;  %vm303_vm12 = vweird.f32 %v3470_v29  ;;  %v2060_v2 = vld [vmem:[%s3396_s0] sm:$0xff] }
 0x145   :  { %vm3115_vm11 = vcmp.le.f32.partialorder %v3496_v18, 0.7853982  ;;  %v510_v0 = vand.u32 3, %v506_v26  ;;  %v3124_v37 = vpop.eup %2036  ;;  %v1005_v11 = vshll.u32 %v3001_v56, %v3077_v58  ;;  %v1006_v47 = vshrl.u32 %v988_v19, %v1004_v55 }
 0x146   :  { %v1010_v23 = vshll.u32 %v1009_v48, 23  ;;  %v312_v41 = vsel %vm305_vm10, %v308_v20, %v311_v62  ;;  %v3129_v16 = vpop.eup %2038  ;;  %2050 = vsinq.f32 %v814_v8  ;;  %v913_v10 = vxor.u32 2147483648, %v912_v9 }
 0x147   :  { %v1336_v31 = vadd.s32 3, %v506_v26  ;;  %v401_v38 = vsel %vm316_vm0, %v400_v27, %v2493_v40  ;;  %v3134_v53 = vpop.eup %2040  ;;  %vm1131_vm13 = vcmp.eq.s32.totalorder %v1129_v60, 0  ;;  %vm1134_vm3 = vcmp.eq.s32.totalorder %v1129_v60, 2 }
 0x148   :  { %v513_v59 = vxor.u32 2147483648, %v3111_v36  ;;  %v516_v56 = vxor.u32 2147483648, %v3106_v14  ;;  %v313_v58 = vsel %vm303_vm12, nan, %v312_v41  ;;  %vm1130_vm8 = vcmp.lt.s32.totalorder %v1129_v60, 2 }
 0x149   :  { %vm512_vm9 = vcmp.eq.s32.totalorder %v510_v0, 0  ;;  %vm515_vm10 = vcmp.eq.s32.totalorder %v510_v0, 2  ;;  %v3140_v28 = vpop.eup %2042  ;;  %v1007_v24 = vor.u32 %v1006_v47, %v1005_v11  ;;  %v1011_v12 = vor.u32 4788187, %v1010_v23 }
 0x14a   :  { %v403_v40 = vsel %vm3036_vm15, 0, %v401_v38  ;;  %v709_v33 = vsub.s32 4, %v2879_v25  ;;  %v3145_v21 = vpop.eup %2044  ;;  %v914_v3 = vsel %vm831_vm7, %v913_v10, %v912_v9  ;;  %v1133_v51 = vsel %vm1131_vm13, %v3068_v6, %v307_v42 }
 0x14b   :  { %v1136_v34 = vsel %vm1134_vm3, %v310_v43, %v3075_v22  ;;  %v1337_v7 = vand.u32 3, %v1336_v31  ;;  %vm511_vm0 = vcmp.lt.s32.totalorder %v510_v0, 2  ;;  %v514_v49 = vsel %vm512_vm9, %v3106_v14, %v513_v59 }
 0x14c   :  { %v517_v8 = vsel %vm515_vm10, %v516_v56, %v3111_v36  ;;  %v407_v61 = vand.u32 3, %v403_v40  ;;  %v74_v45 = vand.u32 1, %v3121_v17  ;;  %v3157_v19 = vmul.f32 %v2060_v2, %v313_v58 }
 0x14d   :  { %vm509_vm15 = vweird.f32 %v3474_v46  ;;  %v1232_v6 = vadd.s32 3, %v403_v40  ;;  %v3160_v42 = vpop.eup %2046  ;;  %v917_v22 = vsel %vm3115_vm11, %v3495_v50, %v914_v3  ;;  %v1012_v43 = vand.u32 2147483647, %v1011_v12  ;;  %v2061_v40 = vld [vmem:[%s3396_s0 + $0x10] sm:$0xff] }
 0x14e   :  { %v1014_v55 = vcvt.s32.f32 %v1007_v24  ;;  %v710_v48 = vsel %vm625_vm2, %v709_v33, %v2879_v25  ;;  %v3168_v9 = vpop.eup %2048  ;;  %vm3441_vm13 = vcmp.lt.s32.totalorder %v2655_v1, 0  ;;  %v1137_v20 = vsel %vm1130_vm8, %v1133_v51, %v1136_v34 }
 0x14f   :  { %v518_v62 = vsel %vm511_vm0, %v514_v49, %v517_v8  ;;  %vm1339_vm3 = vcmp.eq.s32.totalorder %v1337_v7, 0  ;;  %v410_v27 = vxor.u32 2147483648, %v3129_v16  ;;  %vm1342_vm9 = vcmp.eq.s32.totalorder %v1337_v7, 2 }
 0x150   :  { %vm409_vm10 = vcmp.eq.s32.totalorder %v407_v61, 0  ;;  %v413_v18 = vxor.u32 2147483648, %v3124_v37  ;;  %v606_v26 = vsub.s32 4, %v2873_v35  ;;  %v3176_v11 = vpop.eup %2050  ;;  %2052 = vcosq.f32 %v917_v22 }
 0x151   :  { %vm412_vm2 = vcmp.eq.s32.totalorder %v407_v61, 2  ;;  %v1233_v25 = vand.u32 3, %v1232_v6  ;;  %v712_v60 = vsel %vm3063_vm4, 0, %v710_v48  ;;  %2054 = vsinq.f32 %v917_v22 }
 0x152   :  { %vm3182_vm8 = vcmp.le.f32.partialorder %v932_v63, 0.7853982  ;;  %v1015_v47 = vmul.f32 %v1014_v55, %v1012_v43  ;;  %v519_v23 = vsel %vm509_vm15, nan, %v518_v62  ;;  %vm1338_vm0 = vcmp.lt.s32.totalorder %v1337_v7, 2 }
 0x153   :  { %v1341_v41 = vsel %vm1339_vm3, %v3106_v14, %v513_v59  ;;  %v1344_v10 = vsel %vm1342_vm9, %v516_v56, %v3111_v36  ;;  %vm408_vm5 = vcmp.lt.s32.totalorder %v407_v61, 2  ;;  %v411_v5 = vsel %vm409_vm10, %v3124_v37, %v410_v27 }
 0x154   :  { %v414_v63 = vsel %vm412_vm2, %v413_v18, %v3129_v16  ;;  %v716_v38 = vand.u32 3, %v712_v60  ;;  %v607_v58 = vsel %vm522_vm14, %v606_v26, %v2873_v35  ;;  %v915_v24 = vsub.s32 4, %v2969_v4 }
 0x155   :  { %vm1235_vm4 = vcmp.eq.s32.totalorder %v1233_v25, 0  ;;  %v719_v14 = vxor.u32 2147483648, %v3160_v42  ;;  %v722_v36 = vxor.u32 2147483648, %v3145_v21  ;;  %v1544_v59 = vadd.s32 3, %v712_v60 }
 0x156   :  { %v1016_v56 = vxor.u32 2147483648, %v1015_v47  ;;  %v3204_v12 = vsel %vm303_vm12, nan, %v1137_v20  ;;  %v3209_v33 = vmul.f32 %v2061_v40, %v519_v23  ;;  %vm1238_vm14 = vcmp.eq.s32.totalorder %v1233_v25, 2 }
 0x157   :  { %v3212_v35 = vsel %vm1338_vm0, %v1341_v41, %v1344_v10  ;;  %v415_v3 = vsel %vm408_vm5, %v411_v5, %v414_v63  ;;  %vm1234_vm3 = vcmp.lt.s32.totalorder %v1233_v25, 2  ;;  %v609_v51 = vsel %vm3042_vm1, 0, %v607_v58 }
 0x158   :  { %v1237_v29 = vsel %vm1235_vm4, %v3124_v37, %v410_v27  ;;  %vm718_vm12 = vcmp.eq.s32.totalorder %v716_v38, 0  ;;  %vm721_vm9 = vcmp.eq.s32.totalorder %v716_v38, 2  ;;  %v916_v34 = vsel %vm831_vm7, %v915_v24, %v2969_v4 }
 0x159   :  { %v1240_v49 = vsel %vm1238_vm14, %v413_v18, %v3129_v16  ;;  %v720_v7 = vsel %vm718_vm12, %v3145_v21, %v719_v14  ;;  %v723_v8 = vsel %vm721_vm9, %v722_v36, %v3160_v42  ;;  %v1545_v61 = vand.u32 3, %v1544_v59 }
 0x15a   :  { %v1017_v2 = vsel %vm3441_vm13, %v1016_v56, %v1015_v47  ;;  %vm3443_vm1 = vweird.f32 %v3475_v32  ;;  %v613_v37 = vand.u32 3, %v609_v51  ;;  %v1440_v6 = vadd.s32 3, %v609_v51  ;;  %v3229_v22 = vpop.eup %2052 }
 0x15b   :  { %v416_v4 = vsel %vm3443_vm1, nan, %v415_v3  ;;  %vm3442_vm5 = vweird.f32 %v3487_v44  ;;  %vm717_vm7 = vcmp.lt.s32.totalorder %v716_v38, 2  ;;  %v918_v16 = vsel %vm3115_vm11, 0, %v916_v34  ;;  %v3236_v43 = vpop.eup %2054 }
 0x15c   :  { %v3193_v31 = vpop.permute.xlu1 %84  ;;  %v1241_v55 = vsel %vm1234_vm3, %v1237_v29, %v1240_v49  ;;  %v724_v48 = vsel %vm717_vm7, %v720_v7, %v723_v8  ;;  %v616_v20 = vxor.u32 2147483648, %v3140_v28  ;;  %v619_v62 = vxor.u32 2147483648, %v3134_v53 }
 0x15d   :  { %v1020_v27 = vsel %vm3182_vm8, %v2655_v1, %v1017_v2  ;;  %vm1546_vm10 = vcmp.lt.s32.totalorder %v1545_v61, 2  ;;  %vm1547_vm2 = vcmp.eq.s32.totalorder %v1545_v61, 0  ;;  %v812_v18 = vsub.s32 4, %v2917_v52 }
 0x15e   :  { %vm3247_vm11 = vcmp.eq.s32.totalorder %v74_v45, 0  ;;  %vm615_vm0 = vcmp.eq.s32.totalorder %v613_v37, 0  ;;  %vm618_vm4 = vcmp.eq.s32.totalorder %v613_v37, 2  ;;  %v1441_v26 = vand.u32 3, %v1440_v6 }
 0x15f   :  { %v922_v25 = vand.u32 3, %v918_v16  ;;  %v725_v60 = vsel %vm3442_vm5, nan, %v724_v48  ;;  %vm1550_vm14 = vcmp.eq.s32.totalorder %v1545_v61, 2  ;;  %v925_v47 = vxor.u32 2147483648, %v3236_v43 }
 0x160   :  { %v3226_v54 = vpop.permute.xlu1 %88  ;;  %v928_v23 = vxor.u32 2147483648, %v3229_v22  ;;  %2056 = vcosq.f32 %v1020_v27  ;;  %v1549_v45 = vsel %vm1547_vm2, %v3145_v21, %v719_v14  ;;  %v1552_v10 = vsel %vm1550_vm14, %v722_v36, %v3160_v42 }
 0x161   :  { %vm614_vm3 = vcmp.lt.s32.totalorder %v613_v37, 2  ;;  %v617_v5 = vsel %vm615_vm0, %v3134_v53, %v616_v20  ;;  %v620_v63 = vsel %vm618_vm4, %v619_v62, %v3140_v28  ;;  %v1752_v38 = vadd.s32 3, %v918_v16 }
 0x162   :  { %vm3503_vm12 = vcmp.lt.s32.totalorder %v3491_v39, 0  ;;  %vm1443_vm9 = vcmp.eq.s32.totalorder %v1441_v26, 0  ;;  %vm1446_vm7 = vcmp.eq.s32.totalorder %v1441_v26, 2  ;;  %vm924_vm13 = vcmp.eq.s32.totalorder %v922_v25, 0 }
 0x163   :  { %v813_v58 = vsel %vm3503_vm12, %v812_v18, %v2917_v52  ;;  %vm927_vm5 = vcmp.eq.s32.totalorder %v922_v25, 2  ;;  %2058 = vsinq.f32 %v1020_v27  ;;  %vm1891_vm1 = vcmask 261120  }
 0x164   :  { %v1553_v21 = vsel %vm1546_vm10, %v1549_v45, %v1552_v10  ;;  %v926_v42 = vsel %vm924_vm13, %v3229_v22, %v925_v47  ;;  %v929_v24 = vsel %vm927_vm5, %v928_v23, %v3236_v43  ;;  %v621_v59 = vsel %vm614_vm3, %v617_v5, %v620_v63 }
 0x165   :  { %vm1442_vm2 = vcmp.lt.s32.totalorder %v1441_v26, 2  ;;  %v815_v52 = vsel %vm3083_vm6, 0, %v813_v58  ;;  %v1018_v56 = vsub.s32 4, %v2990_v57  ;;  %v1445_v40 = vsel %vm1443_vm9, %v3134_v53, %v616_v20 }
 0x166   :  { %v1448_v3 = vsel %vm1446_vm7, %v619_v62, %v3140_v28  ;;  %vm923_vm10 = vcmp.lt.s32.totalorder %v922_v25, 2  ;;  %v1753_v51 = vand.u32 3, %v1752_v38  ;;  %v1346_v29 = vsel %vm509_vm15, nan, %v3212_v35  ;;  %v2063_v28 = vld [vmem:[%s3396_s0 + $0x20] sm:$0xff] }
 0x167   :  { %vm3504_vm13 = vweird.f32 %v3475_v32  ;;  %v3287_v49 = vmul.f32 %v2062_v13, %v416_v4  ;;  %v930_v7 = vsel %vm923_vm10, %v926_v42, %v929_v24  ;;  %vm3505_vm6 = vweird.f32 %v3487_v44 }
 0x168   :  { %v1242_v34 = vsel %vm3504_vm13, nan, %v1241_v55  ;;  %v1554_v53 = vsel %vm3505_vm6, nan, %v1553_v21  ;;  %v3294_v8 = vmul.f32 %v2063_v28, %v725_v60  ;;  %vm612_vm15 = vweird.f32 %v3479_v15 }
 0x169   :  { %v1648_v46 = vadd.s32 3, %v815_v52  ;;  %v622_v61 = vsel %vm612_vm15, nan, %v621_v59  ;;  %v1449_v2 = vsel %vm1442_vm2, %v1445_v40, %v1448_v3  ;;  %vm921_vm5 = vweird.f32 %v3495_v50 }
 0x16a   :  { %v3255_v41 = vpop.permute.xlu0 %86  ;;  %v3257_v17 = vpop.permute.xlu1 %92  ;;  %vm3506_vm0 = vcmp.lt.s32.totalorder %v2655_v1, 0  ;;  %v931_v6 = vsel %vm921_vm5, nan, %v930_v7  ;;  %vm1755_vm4 = vcmp.eq.s32.totalorder %v1753_v51, 0  ;;  %vm1758_vm14 = vcmp.eq.s32.totalorder %v1753_v51, 2 }
 0x16b   :  { %v1019_v44 = vsel %vm3506_vm0, %v1018_v56, %v2990_v57  ;;  %v3311_v4 = vpop.eup %2056  ;;  %v1757_v55 = vsel %vm1755_vm4, %v3229_v22, %v925_v47  ;;  %v1760_v48 = vsel %vm1758_vm14, %v928_v23, %v3236_v43  ;;  %v819_v20 = vand.u32 3, %v815_v52  ;;  %v2064_v22 = vld [vmem:[%s3396_s0 + $0x18] sm:$0xff] }
 0x16c   :  { %v822_v57 = vxor.u32 2147483648, %v3176_v11  ;;  %v825_v62 = vxor.u32 2147483648, %v3168_v9  ;;  %v1649_v27 = vand.u32 3, %v1648_v46  ;;  %v1870_v43 = vmul.f32 %v2064_v22, %v622_v61 }
 0x16d   :  { %vm1754_vm3 = vcmp.lt.s32.totalorder %v1753_v51, 2  ;;  %v2059_v60 = vpop.eup %2058  ;;  %v1031_v15 = vxor.u32 2147483648, %v3311_v4  ;;  %vm824_vm12 = vcmp.eq.s32.totalorder %v819_v20, 2  ;;  %vm820_vm2 = vcmp.lt.s32.totalorder %v819_v20, 2 }
 0x16e   :  { %v3269_v14 = vpop.permute.xlu0 %90  ;;  %v3271_v36 = vpop.permute.xlu1 %96  ;;  %v1761_v47 = vsel %vm1754_vm3, %v1757_v55, %v1760_v48  ;;  %v826_v63 = vsel %vm824_vm12, %v825_v62, %v3176_v11  ;;  %vm1651_vm9 = vcmp.eq.s32.totalorder %v1649_v27, 0  ;;  %vm1654_vm7 = vcmp.eq.s32.totalorder %v1649_v27, 2 }
 0x16f   :  { %v1653_v21 = vsel %vm1651_vm9, %v3168_v9, %v822_v57  ;;  %v1656_v42 = vsel %vm1654_vm7, %v825_v62, %v3176_v11  ;;  %v1028_v56 = vxor.u32 2147483648, %v2059_v60  ;;  %vm1650_vm10 = vcmp.lt.s32.totalorder %v1649_v27, 2  ;;  %v2067_v62 = vld [vmem:[%s3396_s0 + $0x38] sm:$0xff] }
 0x170   :  { %vm818_vm13 = vweird.f32 %v3491_v39  ;;  %v1657_v51 = vsel %vm1650_vm10, %v1653_v21, %v1656_v42  ;;  %vm1024_vm3 = vweird.f32 %v2655_v1 }
 0x172   :  { %v3297_v32 = vpop.permute.xlu0 %94  ;;  %v109_v35 = vpop.permute.xlu1 %108 }
 0x173   :  { %v132_v37 = vsel %vm3247_vm11, %v3193_v31, %v109_v35  ;;  %v1021_v31 = vsel %vm3182_vm8, 0, %v1019_v44  ;;  %vm821_vm8 = vcmp.eq.s32.totalorder %v819_v20, 0  ;;  %v1658_v44 = vsel %vm818_vm13, nan, %v1657_v51 }
 0x174   :  { %v1875_v16 = vmul.f32 %v3204_v12, %v132_v37  ;;  %v1450_v12 = vsel %vm612_vm15, nan, %v1449_v2  ;;  %v1856_v10 = vadd.s32 3, %v1021_v31  ;;  %v823_v5 = vsel %vm821_vm8, %v3168_v9, %v822_v57 }
 0x175   :  { %v1025_v24 = vand.u32 3, %v1021_v31  ;;  %v1762_v9 = vsel %vm921_vm5, nan, %v1761_v47  ;;  %v827_v11 = vsel %vm820_vm2, %v823_v5, %v826_v63 }
 0x176   :  { %v1883_v18 = vadd.f32 %v1875_v16, %v3157_v19  ;;  %v3321_v26 = vpop.permute.xlu0 %98  ;;  %v113_v25 = vpop.permute.xlu1 %112  ;;  %v2065_v19 = vld [vmem:[%s3396_s0 + $0x30] sm:$0xff]  ;;  %v1857_v3 = vand.u32 3, %v1856_v10 }
 0x177   :  { %v134_v0 = vsel %vm3247_vm11, %v3226_v54, %v113_v25  ;;  %v1873_v23 = vmul.f32 %v2065_v19, %v931_v6  ;;  %vm1027_vm6 = vcmp.eq.s32.totalorder %v1025_v24, 0  ;;  %vm1030_vm15 = vcmp.eq.s32.totalorder %v1025_v24, 2  ;;  %v2066_v6 = vld [vmem:[%s3396_s0 + $0x28] sm:$0xff] }
 0x178   :  { %1892 = vst.msk [vmem:[#allocation2] sm:$0xff] %vm1891_vm1, %v1883_v18  ;;  %v1877_v45 = vmul.f32 %v1346_v29, %v134_v0  ;;  %v1029_v7 = vsel %vm1027_vm6, %v3311_v4, %v1028_v56  ;;  %vm1859_vm5 = vcmp.eq.s32.totalorder %v1857_v3, 0  ;;  %vm1862_vm0 = vcmp.eq.s32.totalorder %v1857_v3, 2 }
 0x179   :  { %vm1026_vm4 = vcmp.lt.s32.totalorder %v1025_v24, 2  ;;  %v1864_v46 = vsel %vm1862_vm0, %v1031_v15, %v2059_v60  ;;  %vm1858_vm14 = vcmp.lt.s32.totalorder %v1857_v3, 2 }
 0x17a   :  { %v1885_v54 = vadd.f32 %v1877_v45, %v3209_v33  ;;  %v111_v38 = vpop.permute.xlu0 %110  ;;  %v117_v58 = vpop.permute.xlu1 %116 }
 0x17b   :  { %v133_v59 = vsel %vm3247_vm11, %v3255_v41, %v111_v38  ;;  %v136_v52 = vsel %vm3247_vm11, %v3257_v17, %v117_v58 }
 0x17c   :  { %1894 = vst.msk [vmem:[#allocation2 + $0x10] sm:$0xff] %vm1891_vm1, %v1885_v54  ;;  %v1876_v33 = vmul.f32 %v1242_v34, %v133_v59  ;;  %v1879_v40 = vmul.f32 %v1554_v53, %v136_v52  ;;  %v1032_v53 = vsel %vm1030_vm15, %v1031_v15, %v2059_v60 }
 0x17d   :  { %v1033_v2 = vsel %vm1026_vm4, %v1029_v7, %v1032_v53 }
 0x17e   :  { %v1884_v41 = vadd.f32 %v1876_v33, %v3287_v49  ;;  %v1887_v29 = vadd.f32 %v1879_v40, %v3294_v8  ;;  %v115_v17 = vpop.permute.xlu0 %114  ;;  %v121_v13 = vpop.permute.xlu1 %120  ;;  %v828_v8 = vsel %vm818_vm13, nan, %v827_v11  ;;  %v1034_v39 = vsel %vm1024_vm3, nan, %v1033_v2 }
 0x17f   :  { %v135_v34 = vsel %vm3247_vm11, %v3269_v14, %v115_v17  ;;  %v138_v50 = vsel %vm3247_vm11, %v3271_v36, %v121_v13  ;;  %v1861_v14 = vsel %vm1859_vm5, %v3311_v4, %v1028_v56  ;;  %v1872_v4 = vmul.f32 %v2066_v6, %v828_v8 }
 0x180   :  { %1893 = vst.msk [vmem:[#allocation2 + $0x8] sm:$0xff] %vm1891_vm1, %v1884_v41  ;;  %1896 = vst.msk [vmem:[#allocation2 + $0x20] sm:$0xff] %vm1891_vm1, %v1887_v29  ;;  %v1878_v49 = vmul.f32 %v1450_v12, %v135_v34  ;;  %v1881_v28 = vmul.f32 %v1762_v9, %v138_v50  ;;  %v1865_v55 = vsel %vm1858_vm14, %v1861_v14, %v1864_v46 }
 0x181   :  { %v1866_v57 = vsel %vm1024_vm3, nan, %v1865_v55  ;;  %v1874_v27 = vmul.f32 %v2067_v62, %v1034_v39 }
 0x182   :  { %v1886_v35 = vadd.f32 %v1878_v49, %v1870_v43  ;;  %v1889_v36 = vadd.f32 %v1881_v28, %v1873_v23  ;;  %v119_v61 = vpop.permute.xlu0 %118 }
 0x183   :  { %v137_v37 = vsel %vm3247_vm11, %v3297_v32, %v119_v61 }
 0x184   :  { %1895 = vst.msk [vmem:[#allocation2 + $0x18] sm:$0xff] %vm1891_vm1, %v1886_v35  ;;  %1898 = vst.msk [vmem:[#allocation2 + $0x30] sm:$0xff] %vm1891_vm1, %v1889_v36  ;;  %v1880_v16 = vmul.f32 %v1658_v44, %v137_v37 }
 0x186   :  { %v1888_v48 = vadd.f32 %v1880_v16, %v1872_v4  ;;  %v123_v20 = vpop.permute.xlu0 %122 }
 0x187   :  { %v139_v32 = vsel %vm3247_vm11, %v3321_v26, %v123_v20 }
 0x188   :  { %1897 = vst.msk [vmem:[#allocation2 + $0x28] sm:$0xff] %vm1891_vm1, %v1888_v48  ;;  %v1882_v31 = vmul.f32 %v1866_v57, %v139_v32 }
 0x18a   :  { %v1890_v1 = vadd.f32 %v1882_v31, %v1874_v27 }
 0x18c   :  { %1899 = vst.msk [vmem:[#allocation2 + $0x38] sm:$0xff] %vm1891_vm1, %v1890_v1 }
 0x18d   :  { %2079 = shalt.err (!%p2076_p4)
}
 0x18e   :  { %s2080_s14 = scalar_lea.hbm %s3399_s3, 1024 }
 0x18f   :  { %p2081_p5 = scmp.ne.s32.totalorder %s3399_s3, %s2080_s14  ;;  %p2084_p6 = scmp.lt.u32.totalorder %s2080_s14, %s3399_s3 }
 0x191   :  { %p2086_p7 = pnand %p2084_p6, %p2081_p5 }
 0x193   :  { %2089 = shalt.err (!%p2086_p7)
}
 0x194   :  { %s2103_s1 = smov 128   ;;  %s2104_s19 = smov 8  }
 0x195   :  { %1911 = dma.vmem_to_hbm [thread:$0]  %s1906_s8, 1024, %s3399_s3, [#allocation3], %s2103_s1, %s2103_s1, %s2104_s19  }
 0x196   :  { %2090 = dma.done.wait [#allocation3], 1024  }
 0x197   :  { %2091 = vsyncadd [#allocation3], 4294966272 }
 0x198   :  { %1915 = vsyncpa [#allocation3], 1 }

</bundles_post_ra>
